<compile_context>
chip_gen: v7x
topology: tpu7x:2x2x1
jax: 0.10.0
libtpu: 0.0.40
codegen_flags: <defaults>
</compile_context>

<pallas_src>
from functools import partial

import jax
import jax.numpy as jnp
from jax import lax
from jax.experimental import pallas as pl
from jax.experimental.pallas import tpu as pltpu


def _round_up(v, m):
    return ((v + m - 1) // m) * m


def _yolo_v1_loss_kernel(x_ref, y_ref, o_ref, acc_ref, *, S, B, C,
                         lambda_coord, lambda_noobj, num_cells, batch_size):
    """x_ref, y_ref: (N, TILE_R, 128) channel planes of one tile of cells."""
    step = pl.program_id(0)
    nsteps = pl.num_programs(0)

    @pl.when(step == 0)
    def _():
        acc_ref[0] = 0.0

    n_rows = x_ref.shape[1]                 # sublanes in this tile (static)
    tile_cells = n_rows * 128
    f32 = jnp.float32
    inv_s = 1.0 / float(S)

    def xc(c):                              # prediction channel plane -> f32
        return x_ref[c].astype(f32)

    def yc(c):                              # target channel plane -> f32
        return y_ref[c].astype(f32)

    # ---- per-cell flat index -> (i, j) cell coordinates + validity mask ----
    # idx = b*S*S + i*S + j (row-major over the original [batch, S, S] grid).
    # Computed in f32 (exact for idx < 2**22, enforced in the wrapper); the
    # +0.5 guards floor-of-quotient against f32 rounding.
    row_io = lax.broadcasted_iota(jnp.int32, (n_rows, 128), 0).astype(f32)
    lane_io = lax.broadcasted_iota(jnp.int32, (n_rows, 128), 1).astype(f32)
    idx = (step * tile_cells).astype(f32) + row_io * 128.0 + lane_io
    valid = idx < float(num_cells)

    cells_per_img = float(S * S)
    within = idx - jnp.floor((idx + 0.5) / cells_per_img) * cells_per_img
    ii = jnp.floor((within + 0.5) / float(S))   # first grid axis  -> added to cx
    jj = within - ii * float(S)                 # second grid axis -> added to cy
    # (matches the reference: self.indexes[i, j] = [i, j]; cx += i, cy += j)

    # ---- masks --------------------------------------------------------------
    conf_t = yc(4)
    coord_m = conf_t > 0.0                           # cells containing objects
    noobj_m = jnp.logical_and(conf_t == 0.0, valid)  # empty (and non-padded)

    # ---- target box slot 0: rescale center, cxcywh -> xyxy, clamp [0,1] -----
    t_cx = (yc(0) + ii) * inv_s
    t_cy = (yc(1) + jj) * inv_s
    t_w = yc(2)
    t_h = yc(3)
    t_x1 = jnp.clip(t_cx - 0.5 * t_w, 0.0, 1.0)
    t_y1 = jnp.clip(t_cy - 0.5 * t_h, 0.0, 1.0)
    t_x2 = jnp.clip(t_cx + 0.5 * t_w, 0.0, 1.0)
    t_y2 = jnp.clip(t_cy + 0.5 * t_h, 0.0, 1.0)
    t_area = (t_x2 - t_x1) * (t_y2 - t_y1)

    # ---- per predicted box: rescaled centers + IoU against target slot 0 ----
    p_cx, p_cy, p_w, p_h, p_cf = [], [], [], [], []
    best_iou = None
    best_idx = None
    for b in range(B):
        cx = (xc(5 * b + 0) + ii) * inv_s
        cy = (xc(5 * b + 1) + jj) * inv_s
        w = xc(5 * b + 2)
        h = xc(5 * b + 3)
        cf = xc(5 * b + 4)
        p_cx.append(cx); p_cy.append(cy); p_w.append(w); p_h.append(h)
        p_cf.append(cf)

        x1 = jnp.clip(cx - 0.5 * w, 0.0, 1.0)
        y1 = jnp.clip(cy - 0.5 * h, 0.0, 1.0)
        x2 = jnp.clip(cx + 0.5 * w, 0.0, 1.0)
        y2 = jnp.clip(cy + 0.5 * h, 0.0, 1.0)
        iw = jnp.maximum(jnp.minimum(x2, t_x2) - jnp.maximum(x1, t_x1), 0.0)
        ih = jnp.maximum(jnp.minimum(y2, t_y2) - jnp.maximum(y1, t_y1), 0.0)
        inter = iw * ih
        union = (x2 - x1) * (y2 - y1) + t_area - inter
        # safe divide: only reachable degenerate case is masked-out cells
        iou = inter / jnp.where(union > 0.0, union, 1.0)

        if b == 0:
            best_iou = iou
            best_idx = jnp.zeros((n_rows, 128), jnp.int32)
        else:
            take = iou > best_iou           # strict '>' == torch first-max tie
            best_iou = jnp.where(take, iou, best_iou)
            best_idx = jnp.where(take, jnp.int32(b), best_idx)

    # ---- responsible pred / target box via where-chain keyed on int best_idx
    pr_cx, pr_cy, pr_w, pr_h, pr_cf = p_cx[0], p_cy[0], p_w[0], p_h[0], p_cf[0]
    # slot-0 target cx/cy were rescaled in-place in the reference; slots b>0
    # keep their raw (cell-relative) values.
    tr_cx, tr_cy, tr_w, tr_h = t_cx, t_cy, t_w, t_h
    for b in range(1, B):
        sel = best_idx == b
        pr_cx = jnp.where(sel, p_cx[b], pr_cx)
        pr_cy = jnp.where(sel, p_cy[b], pr_cy)
        pr_w = jnp.where(sel, p_w[b], pr_w)
        pr_h = jnp.where(sel, p_h[b], pr_h)
        pr_cf = jnp.where(sel, p_cf[b], pr_cf)
        tr_cx = jnp.where(sel, yc(5 * b + 0), tr_cx)
        tr_cy = jnp.where(sel, yc(5 * b + 1), tr_cy)
        tr_w = jnp.where(sel, yc(5 * b + 2), tr_w)
        tr_h = jnp.where(sel, yc(5 * b + 3), tr_h)

    # responsible prediction clamped to [1e-6, 1 - 1e-6] (as in the reference)
    eps_lo, eps_hi = 1e-6, 1.0 - 1e-6
    pr_cx = jnp.clip(pr_cx, eps_lo, eps_hi)
    pr_cy = jnp.clip(pr_cy, eps_lo, eps_hi)
    pr_w = jnp.clip(pr_w, eps_lo, eps_hi)
    pr_h = jnp.clip(pr_h, eps_lo, eps_hi)
    pr_cf = jnp.clip(pr_cf, eps_lo, eps_hi)

    # ---- per-cell loss terms -------------------------------------------------
    loss_xy = (pr_cx - tr_cx) ** 2 + (pr_cy - tr_cy) ** 2
    # guard sqrt against NaN poisoning from cells that are masked out anyway
    tw_s = jnp.where(coord_m, tr_w, 0.0)
    th_s = jnp.where(coord_m, tr_h, 0.0)
    loss_wh = ((jnp.sqrt(pr_w) - jnp.sqrt(tw_s)) ** 2
               + (jnp.sqrt(pr_h) - jnp.sqrt(th_s)) ** 2)
    loss_obj = (pr_cf - best_iou) ** 2

    # class term: plain VPU plane adds (no cross-lane reduce)
    d = xc(5 * B) - yc(5 * B)
    loss_class = d * d
    for c in range(1, C):
        d = xc(5 * B + c) - yc(5 * B + c)
        loss_class = loss_class + d * d

    d = xc(4) - yc(4)
    loss_noobj = d * d
    for b in range(1, B):
        d = xc(5 * b + 4) - yc(5 * b + 4)
        loss_noobj = loss_noobj + d * d

    # ---- single fused reduction ----------------------------------------------
    obj_terms = lambda_coord * (loss_xy + loss_wh) + loss_obj + loss_class
    cell_loss = (jnp.where(coord_m, obj_terms, 0.0)
                 + jnp.where(noobj_m, lambda_noobj * loss_noobj, 0.0))
    acc_ref[0] += jnp.sum(cell_loss)

    @pl.when(step == nsteps - 1)
    def _():
        o_ref[0, 0] = acc_ref[0] / float(batch_size)


def yolo_v1_loss(x, y, *, S=7, B=2, C=20, lambda_coord=5.0, lambda_noobj=0.5):
    """x, y: [batch, S, S, 5*B + C].  Returns scalar loss (sum / batch)."""
    batch = x.shape[0]
    N = 5 * B + C
    assert x.shape == (batch, S, S, N) and y.shape == x.shape
    M = batch * S * S
    # in-kernel f32 index arithmetic is exact/robust up to this many cells
    assert M < (1 << 22), "batch * S * S too large for in-kernel f32 indexing"

    rows_needed = -(-M // 128)
    # tile sized so 2 inputs x 2 double-buffers x tile stays well under the
    # 32 MiB scoped-VMEM default (also safe on v7x's 64 MiB physical VMEM).
    tile_r = min(128, _round_up(rows_needed, 8))
    rows = _round_up(rows_needed, tile_r)
    num_tiles = rows // tile_r
    m_pad = rows * 128

    def to_planes(a):
        # [batch, S, S, N] -> lane-dense, channels-first (N, rows, 128).
        # Padded cells are exact zeros (conf == 0) and are additionally
        # excluded from the no-object term via the in-kernel validity mask.
        flat = a.reshape(M, N)
        flat = jnp.pad(flat, ((0, m_pad - M), (0, 0)))
        return flat.T.reshape(N, rows, 128)

    xp = to_planes(x)   # input dtype preserved; cast to f32 inside the kernel
    yp = to_planes(y)

    kernel = partial(
        _yolo_v1_loss_kernel, S=S, B=B, C=C,
        lambda_coord=float(lambda_coord), lambda_noobj=float(lambda_noobj),
        num_cells=M, batch_size=batch)

    out = pl.pallas_call(
        kernel,
        out_shape=jax.ShapeDtypeStruct((1, 1), jnp.float32),
        grid_spec=pltpu.PrefetchScalarGridSpec(
            num_scalar_prefetch=0,
            grid=(num_tiles,),
            in_specs=[
                pl.BlockSpec((N, tile_r, 128), lambda r: (0, r, 0)),
                pl.BlockSpec((N, tile_r, 128), lambda r: (0, r, 0)),
            ],
            out_specs=pl.BlockSpec(memory_space=pltpu.MemorySpace.SMEM),
            scratch_shapes=[pltpu.SMEM((1,), jnp.float32)],
        ),
        compiler_params=pltpu.CompilerParams(
            dimension_semantics=("arbitrary",)),
    )(xp, yp)
    return out[0, 0]


if __name__ == "__main__":
    S, B, C = 7, 2, 20
    N = 5 * B + C
    batch = 2

    key = jax.random.PRNGKey(0)
    x = jax.random.uniform(key, (batch, S, S, N), dtype=jnp.float32,
                           minval=0.05, maxval=0.95)

    # synthetic yolo-format targets (stand-in for BoundingBox.get_boxes('yolo'))
    y = jnp.zeros((batch, S, S, N), dtype=jnp.float32)
    objs = [  # (batch, i, j, cx, cy, w, h, class)
        (0, 2, 3, 0.40, 0.60, 0.30, 0.25, 7),
        (0, 5, 1, 0.70, 0.20, 0.50, 0.40, 3),
        (1, 1, 4, 0.50, 0.50, 0.20, 0.60, 12),
        (1, 6, 6, 0.30, 0.80, 0.45, 0.35, 0),
    ]
    for (bi, i, j, cx, cy, w, h, cls) in objs:
        box = jnp.array([cx, cy, w, h, 1.0], jnp.float32)
        for bb in range(B):
            y = y.at[bi, i, j, 5 * bb:5 * bb + 5].set(box)
        y = y.at[bi, i, j, 5 * B + cls].set(1.0)

    loss = yolo_v1_loss(x, y, S=S, B=B, C=C, lambda_coord=5.0, lambda_noobj=0.5)
    loss = jax.block_until_ready(loss)
    assert bool(jnp.isfinite(loss)), "loss is not finite"
    print("KERNEL_OK")
</pallas_src>

<mosaic_0001>
module attributes {stable_mosaic.version = 11 : i64} {
  func.func @_yolo_v1_loss_kernel(%arg0: i32, %arg1: memref<30x8x128xf32, #tpu.memory_space<vmem>>, %arg2: memref<30x8x128xf32, #tpu.memory_space<vmem>>, %arg3: memref<1x1xf32, #tpu.memory_space<smem>>, %arg4: memref<1xf32, #tpu.memory_space<smem>>) attributes {dimension_semantics = [#tpu.dimension_semantics<arbitrary>], iteration_bounds = array<i64: 1>, scalar_prefetch = 0 : i64, scratch_operands = 1 : i64, tpu.core_type = #tpu.core_type<tc>, window_params = [{transform_indices = @transform_0, window_bounds = array<i64: 30, 8, 128>}, {transform_indices = @transform_1, window_bounds = array<i64: 30, 8, 128>}, {transform_indices = @transform_2, window_bounds = array<i64: 1, 1>}]} {
    %c0_i32 = arith.constant 0 : i32
    %0 = arith.cmpi eq, %arg0, %c0_i32 : i32
    %1 = arith.extui %0 : i1 to i32
    %c0_i32_0 = arith.constant 0 : i32
    %2 = arith.cmpi ne, %1, %c0_i32_0 : i32
    scf.if %2 {
      %cst_242 = arith.constant 0.000000e+00 : f32
      %c0_243 = arith.constant 0 : index
      %452 = memref.load %arg4[%c0_243] : memref<1xf32, #tpu.memory_space<smem>>
      memref.store %cst_242, %arg4[%c0_243] : memref<1xf32, #tpu.memory_space<smem>>
    } else {
    }
    %3 = tpu.iota {dimensions = array<i32: 0>} : vector<8x128xi32>
    %4 = arith.sitofp %3 : vector<8x128xi32> to vector<8x128xf32>
    %5 = tpu.iota {dimensions = array<i32: 1>} : vector<8x128xi32>
    %6 = arith.sitofp %5 : vector<8x128xi32> to vector<8x128xf32>
    %c1024_i32 = arith.constant 1024 : i32
    %7 = arith.muli %arg0, %c1024_i32 : i32
    %8 = arith.sitofp %7 : i32 to f32
    %cst = arith.constant 1.280000e+02 : f32
    %9 = vector.broadcast %cst : f32 to vector<8x128xf32>
    %10 = arith.mulf %4, %9 : vector<8x128xf32>
    %11 = vector.broadcast %8 : f32 to vector<8x128xf32>
    %12 = arith.addf %11, %10 : vector<8x128xf32>
    %13 = arith.addf %12, %6 : vector<8x128xf32>
    %cst_1 = arith.constant 9.800000e+01 : f32
    %14 = vector.broadcast %cst_1 : f32 to vector<8x128xf32>
    %15 = arith.cmpf olt, %13, %14 : vector<8x128xf32>
    %cst_2 = arith.constant 5.000000e-01 : f32
    %16 = vector.broadcast %cst_2 : f32 to vector<8x128xf32>
    %17 = arith.addf %13, %16 : vector<8x128xf32>
    %cst_3 = arith.constant 4.900000e+01 : f32
    %18 = vector.broadcast %cst_3 : f32 to vector<8x128xf32>
    %19 = arith.divf %17, %18 : vector<8x128xf32>
    %20 = math.floor %19 : vector<8x128xf32>
    %cst_4 = arith.constant 4.900000e+01 : f32
    %21 = vector.broadcast %cst_4 : f32 to vector<8x128xf32>
    %22 = arith.mulf %20, %21 : vector<8x128xf32>
    %23 = arith.subf %13, %22 : vector<8x128xf32>
    %cst_5 = arith.constant 5.000000e-01 : f32
    %24 = vector.broadcast %cst_5 : f32 to vector<8x128xf32>
    %25 = arith.addf %23, %24 : vector<8x128xf32>
    %cst_6 = arith.constant 7.000000e+00 : f32
    %26 = vector.broadcast %cst_6 : f32 to vector<8x128xf32>
    %27 = arith.divf %25, %26 : vector<8x128xf32>
    %28 = math.floor %27 : vector<8x128xf32>
    %cst_7 = arith.constant 7.000000e+00 : f32
    %29 = vector.broadcast %cst_7 : f32 to vector<8x128xf32>
    %30 = arith.mulf %28, %29 : vector<8x128xf32>
    %31 = arith.subf %23, %30 : vector<8x128xf32>
    %c4 = arith.constant 4 : index
    %c0 = arith.constant 0 : index
    %c0_8 = arith.constant 0 : index
    %32 = vector.load %arg2[%c4, %c0, %c0_8] : memref<30x8x128xf32, #tpu.memory_space<vmem>>, vector<1x8x128xf32>
    %33 = vector.shape_cast %32 : vector<1x8x128xf32> to vector<8x128xf32>
    %cst_9 = arith.constant 0.000000e+00 : f32
    %34 = vector.broadcast %cst_9 : f32 to vector<8x128xf32>
    %35 = arith.cmpf ogt, %33, %34 : vector<8x128xf32>
    %cst_10 = arith.constant 0.000000e+00 : f32
    %36 = vector.broadcast %cst_10 : f32 to vector<8x128xf32>
    %37 = arith.cmpf oeq, %33, %36 : vector<8x128xf32>
    %38 = arith.andi %37, %15 : vector<8x128xi1>
    %c0_11 = arith.constant 0 : index
    %c0_12 = arith.constant 0 : index
    %c0_13 = arith.constant 0 : index
    %39 = vector.load %arg2[%c0_11, %c0_12, %c0_13] : memref<30x8x128xf32, #tpu.memory_space<vmem>>, vector<1x8x128xf32>
    %40 = vector.shape_cast %39 : vector<1x8x128xf32> to vector<8x128xf32>
    %41 = arith.addf %40, %28 : vector<8x128xf32>
    %cst_14 = arith.constant 0.142857149 : f32
    %42 = vector.broadcast %cst_14 : f32 to vector<8x128xf32>
    %43 = arith.mulf %41, %42 : vector<8x128xf32>
    %c1 = arith.constant 1 : index
    %c0_15 = arith.constant 0 : index
    %c0_16 = arith.constant 0 : index
    %44 = vector.load %arg2[%c1, %c0_15, %c0_16] : memref<30x8x128xf32, #tpu.memory_space<vmem>>, vector<1x8x128xf32>
    %45 = vector.shape_cast %44 : vector<1x8x128xf32> to vector<8x128xf32>
    %46 = arith.addf %45, %31 : vector<8x128xf32>
    %cst_17 = arith.constant 0.142857149 : f32
    %47 = vector.broadcast %cst_17 : f32 to vector<8x128xf32>
    %48 = arith.mulf %46, %47 : vector<8x128xf32>
    %c2 = arith.constant 2 : index
    %c0_18 = arith.constant 0 : index
    %c0_19 = arith.constant 0 : index
    %49 = vector.load %arg2[%c2, %c0_18, %c0_19] : memref<30x8x128xf32, #tpu.memory_space<vmem>>, vector<1x8x128xf32>
    %50 = vector.shape_cast %49 : vector<1x8x128xf32> to vector<8x128xf32>
    %c3 = arith.constant 3 : index
    %c0_20 = arith.constant 0 : index
    %c0_21 = arith.constant 0 : index
    %51 = vector.load %arg2[%c3, %c0_20, %c0_21] : memref<30x8x128xf32, #tpu.memory_space<vmem>>, vector<1x8x128xf32>
    %52 = vector.shape_cast %51 : vector<1x8x128xf32> to vector<8x128xf32>
    %cst_22 = arith.constant 5.000000e-01 : f32
    %53 = vector.broadcast %cst_22 : f32 to vector<8x128xf32>
    %54 = arith.mulf %53, %50 : vector<8x128xf32>
    %55 = arith.subf %43, %54 : vector<8x128xf32>
    %cst_23 = arith.constant 0.000000e+00 : f32
    %cst_24 = arith.constant 1.000000e+00 : f32
    %56 = vector.broadcast %cst_23 : f32 to vector<8x128xf32>
    %57 = arith.maximumf %56, %55 : vector<8x128xf32>
    %58 = vector.broadcast %cst_24 : f32 to vector<8x128xf32>
    %59 = arith.minimumf %58, %57 : vector<8x128xf32>
    %cst_25 = arith.constant 5.000000e-01 : f32
    %60 = vector.broadcast %cst_25 : f32 to vector<8x128xf32>
    %61 = arith.mulf %60, %52 : vector<8x128xf32>
    %62 = arith.subf %48, %61 : vector<8x128xf32>
    %cst_26 = arith.constant 0.000000e+00 : f32
    %cst_27 = arith.constant 1.000000e+00 : f32
    %63 = vector.broadcast %cst_26 : f32 to vector<8x128xf32>
    %64 = arith.maximumf %63, %62 : vector<8x128xf32>
    %65 = vector.broadcast %cst_27 : f32 to vector<8x128xf32>
    %66 = arith.minimumf %65, %64 : vector<8x128xf32>
    %cst_28 = arith.constant 5.000000e-01 : f32
    %67 = vector.broadcast %cst_28 : f32 to vector<8x128xf32>
    %68 = arith.mulf %67, %50 : vector<8x128xf32>
    %69 = arith.addf %43, %68 : vector<8x128xf32>
    %cst_29 = arith.constant 0.000000e+00 : f32
    %cst_30 = arith.constant 1.000000e+00 : f32
    %70 = vector.broadcast %cst_29 : f32 to vector<8x128xf32>
    %71 = arith.maximumf %70, %69 : vector<8x128xf32>
    %72 = vector.broadcast %cst_30 : f32 to vector<8x128xf32>
    %73 = arith.minimumf %72, %71 : vector<8x128xf32>
    %cst_31 = arith.constant 5.000000e-01 : f32
    %74 = vector.broadcast %cst_31 : f32 to vector<8x128xf32>
    %75 = arith.mulf %74, %52 : vector<8x128xf32>
    %76 = arith.addf %48, %75 : vector<8x128xf32>
    %cst_32 = arith.constant 0.000000e+00 : f32
    %cst_33 = arith.constant 1.000000e+00 : f32
    %77 = vector.broadcast %cst_32 : f32 to vector<8x128xf32>
    %78 = arith.maximumf %77, %76 : vector<8x128xf32>
    %79 = vector.broadcast %cst_33 : f32 to vector<8x128xf32>
    %80 = arith.minimumf %79, %78 : vector<8x128xf32>
    %81 = arith.subf %73, %59 : vector<8x128xf32>
    %82 = arith.subf %80, %66 : vector<8x128xf32>
    %83 = arith.mulf %81, %82 : vector<8x128xf32>
    %c0_34 = arith.constant 0 : index
    %c0_35 = arith.constant 0 : index
    %c0_36 = arith.constant 0 : index
    %84 = vector.load %arg1[%c0_34, %c0_35, %c0_36] : memref<30x8x128xf32, #tpu.memory_space<vmem>>, vector<1x8x128xf32>
    %85 = vector.shape_cast %84 : vector<1x8x128xf32> to vector<8x128xf32>
    %86 = arith.addf %85, %28 : vector<8x128xf32>
    %cst_37 = arith.constant 0.142857149 : f32
    %87 = vector.broadcast %cst_37 : f32 to vector<8x128xf32>
    %88 = arith.mulf %86, %87 : vector<8x128xf32>
    %c1_38 = arith.constant 1 : index
    %c0_39 = arith.constant 0 : index
    %c0_40 = arith.constant 0 : index
    %89 = vector.load %arg1[%c1_38, %c0_39, %c0_40] : memref<30x8x128xf32, #tpu.memory_space<vmem>>, vector<1x8x128xf32>
    %90 = vector.shape_cast %89 : vector<1x8x128xf32> to vector<8x128xf32>
    %91 = arith.addf %90, %31 : vector<8x128xf32>
    %cst_41 = arith.constant 0.142857149 : f32
    %92 = vector.broadcast %cst_41 : f32 to vector<8x128xf32>
    %93 = arith.mulf %91, %92 : vector<8x128xf32>
    %c2_42 = arith.constant 2 : index
    %c0_43 = arith.constant 0 : index
    %c0_44 = arith.constant 0 : index
    %94 = vector.load %arg1[%c2_42, %c0_43, %c0_44] : memref<30x8x128xf32, #tpu.memory_space<vmem>>, vector<1x8x128xf32>
    %95 = vector.shape_cast %94 : vector<1x8x128xf32> to vector<8x128xf32>
    %c3_45 = arith.constant 3 : index
    %c0_46 = arith.constant 0 : index
    %c0_47 = arith.constant 0 : index
    %96 = vector.load %arg1[%c3_45, %c0_46, %c0_47] : memref<30x8x128xf32, #tpu.memory_space<vmem>>, vector<1x8x128xf32>
    %97 = vector.shape_cast %96 : vector<1x8x128xf32> to vector<8x128xf32>
    %c4_48 = arith.constant 4 : index
    %c0_49 = arith.constant 0 : index
    %c0_50 = arith.constant 0 : index
    %98 = vector.load %arg1[%c4_48, %c0_49, %c0_50] : memref<30x8x128xf32, #tpu.memory_space<vmem>>, vector<1x8x128xf32>
    %99 = vector.shape_cast %98 : vector<1x8x128xf32> to vector<8x128xf32>
    %cst_51 = arith.constant 5.000000e-01 : f32
    %100 = vector.broadcast %cst_51 : f32 to vector<8x128xf32>
    %101 = arith.mulf %100, %95 : vector<8x128xf32>
    %102 = arith.subf %88, %101 : vector<8x128xf32>
    %cst_52 = arith.constant 0.000000e+00 : f32
    %cst_53 = arith.constant 1.000000e+00 : f32
    %103 = vector.broadcast %cst_52 : f32 to vector<8x128xf32>
    %104 = arith.maximumf %103, %102 : vector<8x128xf32>
    %105 = vector.broadcast %cst_53 : f32 to vector<8x128xf32>
    %106 = arith.minimumf %105, %104 : vector<8x128xf32>
    %cst_54 = arith.constant 5.000000e-01 : f32
    %107 = vector.broadcast %cst_54 : f32 to vector<8x128xf32>
    %108 = arith.mulf %107, %97 : vector<8x128xf32>
    %109 = arith.subf %93, %108 : vector<8x128xf32>
    %cst_55 = arith.constant 0.000000e+00 : f32
    %cst_56 = arith.constant 1.000000e+00 : f32
    %110 = vector.broadcast %cst_55 : f32 to vector<8x128xf32>
    %111 = arith.maximumf %110, %109 : vector<8x128xf32>
    %112 = vector.broadcast %cst_56 : f32 to vector<8x128xf32>
    %113 = arith.minimumf %112, %111 : vector<8x128xf32>
    %cst_57 = arith.constant 5.000000e-01 : f32
    %114 = vector.broadcast %cst_57 : f32 to vector<8x128xf32>
    %115 = arith.mulf %114, %95 : vector<8x128xf32>
    %116 = arith.addf %88, %115 : vector<8x128xf32>
    %cst_58 = arith.constant 0.000000e+00 : f32
    %cst_59 = arith.constant 1.000000e+00 : f32
    %117 = vector.broadcast %cst_58 : f32 to vector<8x128xf32>
    %118 = arith.maximumf %117, %116 : vector<8x128xf32>
    %119 = vector.broadcast %cst_59 : f32 to vector<8x128xf32>
    %120 = arith.minimumf %119, %118 : vector<8x128xf32>
    %cst_60 = arith.constant 5.000000e-01 : f32
    %121 = vector.broadcast %cst_60 : f32 to vector<8x128xf32>
    %122 = arith.mulf %121, %97 : vector<8x128xf32>
    %123 = arith.addf %93, %122 : vector<8x128xf32>
    %cst_61 = arith.constant 0.000000e+00 : f32
    %cst_62 = arith.constant 1.000000e+00 : f32
    %124 = vector.broadcast %cst_61 : f32 to vector<8x128xf32>
    %125 = arith.maximumf %124, %123 : vector<8x128xf32>
    %126 = vector.broadcast %cst_62 : f32 to vector<8x128xf32>
    %127 = arith.minimumf %126, %125 : vector<8x128xf32>
    %128 = arith.minimumf %120, %73 : vector<8x128xf32>
    %129 = arith.maximumf %106, %59 : vector<8x128xf32>
    %130 = arith.subf %128, %129 : vector<8x128xf32>
    %cst_63 = arith.constant 0.000000e+00 : f32
    %131 = vector.broadcast %cst_63 : f32 to vector<8x128xf32>
    %132 = arith.maximumf %130, %131 : vector<8x128xf32>
    %133 = arith.minimumf %127, %80 : vector<8x128xf32>
    %134 = arith.maximumf %113, %66 : vector<8x128xf32>
    %135 = arith.subf %133, %134 : vector<8x128xf32>
    %cst_64 = arith.constant 0.000000e+00 : f32
    %136 = vector.broadcast %cst_64 : f32 to vector<8x128xf32>
    %137 = arith.maximumf %135, %136 : vector<8x128xf32>
    %138 = arith.mulf %132, %137 : vector<8x128xf32>
    %139 = arith.subf %120, %106 : vector<8x128xf32>
    %140 = arith.subf %127, %113 : vector<8x128xf32>
    %141 = arith.mulf %139, %140 : vector<8x128xf32>
    %142 = arith.addf %141, %83 : vector<8x128xf32>
    %143 = arith.subf %142, %138 : vector<8x128xf32>
    %cst_65 = arith.constant 0.000000e+00 : f32
    %144 = vector.broadcast %cst_65 : f32 to vector<8x128xf32>
    %145 = arith.cmpf ogt, %143, %144 : vector<8x128xf32>
    %cst_66 = arith.constant 1.000000e+00 : f32
    %146 = vector.broadcast %cst_66 : f32 to vector<8x128xf32>
    %147 = arith.select %145, %143, %146 : vector<8x128xi1>, vector<8x128xf32>
    %148 = arith.divf %138, %147 : vector<8x128xf32>
    %c0_i32_67 = arith.constant 0 : i32
    %149 = vector.broadcast %c0_i32_67 : i32 to vector<8x128xi32>
    %c5 = arith.constant 5 : index
    %c0_68 = arith.constant 0 : index
    %c0_69 = arith.constant 0 : index
    %150 = vector.load %arg1[%c5, %c0_68, %c0_69] : memref<30x8x128xf32, #tpu.memory_space<vmem>>, vector<1x8x128xf32>
    %151 = vector.shape_cast %150 : vector<1x8x128xf32> to vector<8x128xf32>
    %152 = arith.addf %151, %28 : vector<8x128xf32>
    %cst_70 = arith.constant 0.142857149 : f32
    %153 = vector.broadcast %cst_70 : f32 to vector<8x128xf32>
    %154 = arith.mulf %152, %153 : vector<8x128xf32>
    %c6 = arith.constant 6 : index
    %c0_71 = arith.constant 0 : index
    %c0_72 = arith.constant 0 : index
    %155 = vector.load %arg1[%c6, %c0_71, %c0_72] : memref<30x8x128xf32, #tpu.memory_space<vmem>>, vector<1x8x128xf32>
    %156 = vector.shape_cast %155 : vector<1x8x128xf32> to vector<8x128xf32>
    %157 = arith.addf %156, %31 : vector<8x128xf32>
    %cst_73 = arith.constant 0.142857149 : f32
    %158 = vector.broadcast %cst_73 : f32 to vector<8x128xf32>
    %159 = arith.mulf %157, %158 : vector<8x128xf32>
    %c7 = arith.constant 7 : index
    %c0_74 = arith.constant 0 : index
    %c0_75 = arith.constant 0 : index
    %160 = vector.load %arg1[%c7, %c0_74, %c0_75] : memref<30x8x128xf32, #tpu.memory_space<vmem>>, vector<1x8x128xf32>
    %161 = vector.shape_cast %160 : vector<1x8x128xf32> to vector<8x128xf32>
    %c8 = arith.constant 8 : index
    %c0_76 = arith.constant 0 : index
    %c0_77 = arith.constant 0 : index
    %162 = vector.load %arg1[%c8, %c0_76, %c0_77] : memref<30x8x128xf32, #tpu.memory_space<vmem>>, vector<1x8x128xf32>
    %163 = vector.shape_cast %162 : vector<1x8x128xf32> to vector<8x128xf32>
    %c9 = arith.constant 9 : index
    %c0_78 = arith.constant 0 : index
    %c0_79 = arith.constant 0 : index
    %164 = vector.load %arg1[%c9, %c0_78, %c0_79] : memref<30x8x128xf32, #tpu.memory_space<vmem>>, vector<1x8x128xf32>
    %165 = vector.shape_cast %164 : vector<1x8x128xf32> to vector<8x128xf32>
    %cst_80 = arith.constant 5.000000e-01 : f32
    %166 = vector.broadcast %cst_80 : f32 to vector<8x128xf32>
    %167 = arith.mulf %166, %161 : vector<8x128xf32>
    %168 = arith.subf %154, %167 : vector<8x128xf32>
    %cst_81 = arith.constant 0.000000e+00 : f32
    %cst_82 = arith.constant 1.000000e+00 : f32
    %169 = vector.broadcast %cst_81 : f32 to vector<8x128xf32>
    %170 = arith.maximumf %169, %168 : vector<8x128xf32>
    %171 = vector.broadcast %cst_82 : f32 to vector<8x128xf32>
    %172 = arith.minimumf %171, %170 : vector<8x128xf32>
    %cst_83 = arith.constant 5.000000e-01 : f32
    %173 = vector.broadcast %cst_83 : f32 to vector<8x128xf32>
    %174 = arith.mulf %173, %163 : vector<8x128xf32>
    %175 = arith.subf %159, %174 : vector<8x128xf32>
    %cst_84 = arith.constant 0.000000e+00 : f32
    %cst_85 = arith.constant 1.000000e+00 : f32
    %176 = vector.broadcast %cst_84 : f32 to vector<8x128xf32>
    %177 = arith.maximumf %176, %175 : vector<8x128xf32>
    %178 = vector.broadcast %cst_85 : f32 to vector<8x128xf32>
    %179 = arith.minimumf %178, %177 : vector<8x128xf32>
    %cst_86 = arith.constant 5.000000e-01 : f32
    %180 = vector.broadcast %cst_86 : f32 to vector<8x128xf32>
    %181 = arith.mulf %180, %161 : vector<8x128xf32>
    %182 = arith.addf %154, %181 : vector<8x128xf32>
    %cst_87 = arith.constant 0.000000e+00 : f32
    %cst_88 = arith.constant 1.000000e+00 : f32
    %183 = vector.broadcast %cst_87 : f32 to vector<8x128xf32>
    %184 = arith.maximumf %183, %182 : vector<8x128xf32>
    %185 = vector.broadcast %cst_88 : f32 to vector<8x128xf32>
    %186 = arith.minimumf %185, %184 : vector<8x128xf32>
    %cst_89 = arith.constant 5.000000e-01 : f32
    %187 = vector.broadcast %cst_89 : f32 to vector<8x128xf32>
    %188 = arith.mulf %187, %163 : vector<8x128xf32>
    %189 = arith.addf %159, %188 : vector<8x128xf32>
    %cst_90 = arith.constant 0.000000e+00 : f32
    %cst_91 = arith.constant 1.000000e+00 : f32
    %190 = vector.broadcast %cst_90 : f32 to vector<8x128xf32>
    %191 = arith.maximumf %190, %189 : vector<8x128xf32>
    %192 = vector.broadcast %cst_91 : f32 to vector<8x128xf32>
    %193 = arith.minimumf %192, %191 : vector<8x128xf32>
    %194 = arith.minimumf %186, %73 : vector<8x128xf32>
    %195 = arith.maximumf %172, %59 : vector<8x128xf32>
    %196 = arith.subf %194, %195 : vector<8x128xf32>
    %cst_92 = arith.constant 0.000000e+00 : f32
    %197 = vector.broadcast %cst_92 : f32 to vector<8x128xf32>
    %198 = arith.maximumf %196, %197 : vector<8x128xf32>
    %199 = arith.minimumf %193, %80 : vector<8x128xf32>
    %200 = arith.maximumf %179, %66 : vector<8x128xf32>
    %201 = arith.subf %199, %200 : vector<8x128xf32>
    %cst_93 = arith.constant 0.000000e+00 : f32
    %202 = vector.broadcast %cst_93 : f32 to vector<8x128xf32>
    %203 = arith.maximumf %201, %202 : vector<8x128xf32>
    %204 = arith.mulf %198, %203 : vector<8x128xf32>
    %205 = arith.subf %186, %172 : vector<8x128xf32>
    %206 = arith.subf %193, %179 : vector<8x128xf32>
    %207 = arith.mulf %205, %206 : vector<8x128xf32>
    %208 = arith.addf %207, %83 : vector<8x128xf32>
    %209 = arith.subf %208, %204 : vector<8x128xf32>
    %cst_94 = arith.constant 0.000000e+00 : f32
    %210 = vector.broadcast %cst_94 : f32 to vector<8x128xf32>
    %211 = arith.cmpf ogt, %209, %210 : vector<8x128xf32>
    %cst_95 = arith.constant 1.000000e+00 : f32
    %212 = vector.broadcast %cst_95 : f32 to vector<8x128xf32>
    %213 = arith.select %211, %209, %212 : vector<8x128xi1>, vector<8x128xf32>
    %214 = arith.divf %204, %213 : vector<8x128xf32>
    %215 = arith.cmpf ogt, %214, %148 : vector<8x128xf32>
    %216 = arith.select %215, %214, %148 : vector<8x128xi1>, vector<8x128xf32>
    %c1_i32 = arith.constant 1 : i32
    %217 = vector.broadcast %c1_i32 : i32 to vector<8x128xi32>
    %218 = arith.select %215, %217, %149 : vector<8x128xi1>, vector<8x128xi32>
    %c1_i32_96 = arith.constant 1 : i32
    %219 = vector.broadcast %c1_i32_96 : i32 to vector<8x128xi32>
    %220 = arith.cmpi eq, %218, %219 : vector<8x128xi32>
    %221 = arith.select %220, %154, %88 : vector<8x128xi1>, vector<8x128xf32>
    %222 = arith.select %220, %159, %93 : vector<8x128xi1>, vector<8x128xf32>
    %223 = arith.select %220, %161, %95 : vector<8x128xi1>, vector<8x128xf32>
    %224 = arith.select %220, %163, %97 : vector<8x128xi1>, vector<8x128xf32>
    %225 = arith.select %220, %165, %99 : vector<8x128xi1>, vector<8x128xf32>
    %c5_97 = arith.constant 5 : index
    %c0_98 = arith.constant 0 : index
    %c0_99 = arith.constant 0 : index
    %226 = vector.load %arg2[%c5_97, %c0_98, %c0_99] : memref<30x8x128xf32, #tpu.memory_space<vmem>>, vector<1x8x128xf32>
    %227 = vector.shape_cast %226 : vector<1x8x128xf32> to vector<8x128xf32>
    %228 = arith.select %220, %227, %43 : vector<8x128xi1>, vector<8x128xf32>
    %c6_100 = arith.constant 6 : index
    %c0_101 = arith.constant 0 : index
    %c0_102 = arith.constant 0 : index
    %229 = vector.load %arg2[%c6_100, %c0_101, %c0_102] : memref<30x8x128xf32, #tpu.memory_space<vmem>>, vector<1x8x128xf32>
    %230 = vector.shape_cast %229 : vector<1x8x128xf32> to vector<8x128xf32>
    %231 = arith.select %220, %230, %48 : vector<8x128xi1>, vector<8x128xf32>
    %c7_103 = arith.constant 7 : index
    %c0_104 = arith.constant 0 : index
    %c0_105 = arith.constant 0 : index
    %232 = vector.load %arg2[%c7_103, %c0_104, %c0_105] : memref<30x8x128xf32, #tpu.memory_space<vmem>>, vector<1x8x128xf32>
    %233 = vector.shape_cast %232 : vector<1x8x128xf32> to vector<8x128xf32>
    %234 = arith.select %220, %233, %50 : vector<8x128xi1>, vector<8x128xf32>
    %c8_106 = arith.constant 8 : index
    %c0_107 = arith.constant 0 : index
    %c0_108 = arith.constant 0 : index
    %235 = vector.load %arg2[%c8_106, %c0_107, %c0_108] : memref<30x8x128xf32, #tpu.memory_space<vmem>>, vector<1x8x128xf32>
    %236 = vector.shape_cast %235 : vector<1x8x128xf32> to vector<8x128xf32>
    %237 = arith.select %220, %236, %52 : vector<8x128xi1>, vector<8x128xf32>
    %cst_109 = arith.constant 9.99999997E-7 : f32
    %cst_110 = arith.constant 0.999998986 : f32
    %238 = vector.broadcast %cst_109 : f32 to vector<8x128xf32>
    %239 = arith.maximumf %238, %221 : vector<8x128xf32>
    %240 = vector.broadcast %cst_110 : f32 to vector<8x128xf32>
    %241 = arith.minimumf %240, %239 : vector<8x128xf32>
    %cst_111 = arith.constant 9.99999997E-7 : f32
    %cst_112 = arith.constant 0.999998986 : f32
    %242 = vector.broadcast %cst_111 : f32 to vector<8x128xf32>
    %243 = arith.maximumf %242, %222 : vector<8x128xf32>
    %244 = vector.broadcast %cst_112 : f32 to vector<8x128xf32>
    %245 = arith.minimumf %244, %243 : vector<8x128xf32>
    %cst_113 = arith.constant 9.99999997E-7 : f32
    %cst_114 = arith.constant 0.999998986 : f32
    %246 = vector.broadcast %cst_113 : f32 to vector<8x128xf32>
    %247 = arith.maximumf %246, %223 : vector<8x128xf32>
    %248 = vector.broadcast %cst_114 : f32 to vector<8x128xf32>
    %249 = arith.minimumf %248, %247 : vector<8x128xf32>
    %cst_115 = arith.constant 9.99999997E-7 : f32
    %cst_116 = arith.constant 0.999998986 : f32
    %250 = vector.broadcast %cst_115 : f32 to vector<8x128xf32>
    %251 = arith.maximumf %250, %224 : vector<8x128xf32>
    %252 = vector.broadcast %cst_116 : f32 to vector<8x128xf32>
    %253 = arith.minimumf %252, %251 : vector<8x128xf32>
    %cst_117 = arith.constant 9.99999997E-7 : f32
    %cst_118 = arith.constant 0.999998986 : f32
    %254 = vector.broadcast %cst_117 : f32 to vector<8x128xf32>
    %255 = arith.maximumf %254, %225 : vector<8x128xf32>
    %256 = vector.broadcast %cst_118 : f32 to vector<8x128xf32>
    %257 = arith.minimumf %256, %255 : vector<8x128xf32>
    %258 = arith.subf %241, %228 : vector<8x128xf32>
    %259 = arith.mulf %258, %258 : vector<8x128xf32>
    %260 = arith.subf %245, %231 : vector<8x128xf32>
    %261 = arith.mulf %260, %260 : vector<8x128xf32>
    %262 = arith.addf %259, %261 : vector<8x128xf32>
    %cst_119 = arith.constant 0.000000e+00 : f32
    %263 = vector.broadcast %cst_119 : f32 to vector<8x128xf32>
    %264 = arith.select %35, %234, %263 : vector<8x128xi1>, vector<8x128xf32>
    %cst_120 = arith.constant 0.000000e+00 : f32
    %265 = vector.broadcast %cst_120 : f32 to vector<8x128xf32>
    %266 = arith.select %35, %237, %265 : vector<8x128xi1>, vector<8x128xf32>
    %267 = math.sqrt %249 : vector<8x128xf32>
    %268 = math.sqrt %264 : vector<8x128xf32>
    %269 = arith.subf %267, %268 : vector<8x128xf32>
    %270 = arith.mulf %269, %269 : vector<8x128xf32>
    %271 = math.sqrt %253 : vector<8x128xf32>
    %272 = math.sqrt %266 : vector<8x128xf32>
    %273 = arith.subf %271, %272 : vector<8x128xf32>
    %274 = arith.mulf %273, %273 : vector<8x128xf32>
    %275 = arith.addf %270, %274 : vector<8x128xf32>
    %276 = arith.subf %257, %216 : vector<8x128xf32>
    %277 = arith.mulf %276, %276 : vector<8x128xf32>
    %c10 = arith.constant 10 : index
    %c0_121 = arith.constant 0 : index
    %c0_122 = arith.constant 0 : index
    %278 = vector.load %arg1[%c10, %c0_121, %c0_122] : memref<30x8x128xf32, #tpu.memory_space<vmem>>, vector<1x8x128xf32>
    %279 = vector.shape_cast %278 : vector<1x8x128xf32> to vector<8x128xf32>
    %c10_123 = arith.constant 10 : index
    %c0_124 = arith.constant 0 : index
    %c0_125 = arith.constant 0 : index
    %280 = vector.load %arg2[%c10_123, %c0_124, %c0_125] : memref<30x8x128xf32, #tpu.memory_space<vmem>>, vector<1x8x128xf32>
    %281 = vector.shape_cast %280 : vector<1x8x128xf32> to vector<8x128xf32>
    %282 = arith.subf %279, %281 : vector<8x128xf32>
    %283 = arith.mulf %282, %282 : vector<8x128xf32>
    %c11 = arith.constant 11 : index
    %c0_126 = arith.constant 0 : index
    %c0_127 = arith.constant 0 : index
    %284 = vector.load %arg1[%c11, %c0_126, %c0_127] : memref<30x8x128xf32, #tpu.memory_space<vmem>>, vector<1x8x128xf32>
    %285 = vector.shape_cast %284 : vector<1x8x128xf32> to vector<8x128xf32>
    %c11_128 = arith.constant 11 : index
    %c0_129 = arith.constant 0 : index
    %c0_130 = arith.constant 0 : index
    %286 = vector.load %arg2[%c11_128, %c0_129, %c0_130] : memref<30x8x128xf32, #tpu.memory_space<vmem>>, vector<1x8x128xf32>
    %287 = vector.shape_cast %286 : vector<1x8x128xf32> to vector<8x128xf32>
    %288 = arith.subf %285, %287 : vector<8x128xf32>
    %289 = arith.mulf %288, %288 : vector<8x128xf32>
    %290 = arith.addf %283, %289 : vector<8x128xf32>
    %c12 = arith.constant 12 : index
    %c0_131 = arith.constant 0 : index
    %c0_132 = arith.constant 0 : index
    %291 = vector.load %arg1[%c12, %c0_131, %c0_132] : memref<30x8x128xf32, #tpu.memory_space<vmem>>, vector<1x8x128xf32>
    %292 = vector.shape_cast %291 : vector<1x8x128xf32> to vector<8x128xf32>
    %c12_133 = arith.constant 12 : index
    %c0_134 = arith.constant 0 : index
    %c0_135 = arith.constant 0 : index
    %293 = vector.load %arg2[%c12_133, %c0_134, %c0_135] : memref<30x8x128xf32, #tpu.memory_space<vmem>>, vector<1x8x128xf32>
    %294 = vector.shape_cast %293 : vector<1x8x128xf32> to vector<8x128xf32>
    %295 = arith.subf %292, %294 : vector<8x128xf32>
    %296 = arith.mulf %295, %295 : vector<8x128xf32>
    %297 = arith.addf %290, %296 : vector<8x128xf32>
    %c13 = arith.constant 13 : index
    %c0_136 = arith.constant 0 : index
    %c0_137 = arith.constant 0 : index
    %298 = vector.load %arg1[%c13, %c0_136, %c0_137] : memref<30x8x128xf32, #tpu.memory_space<vmem>>, vector<1x8x128xf32>
    %299 = vector.shape_cast %298 : vector<1x8x128xf32> to vector<8x128xf32>
    %c13_138 = arith.constant 13 : index
    %c0_139 = arith.constant 0 : index
    %c0_140 = arith.constant 0 : index
    %300 = vector.load %arg2[%c13_138, %c0_139, %c0_140] : memref<30x8x128xf32, #tpu.memory_space<vmem>>, vector<1x8x128xf32>
    %301 = vector.shape_cast %300 : vector<1x8x128xf32> to vector<8x128xf32>
    %302 = arith.subf %299, %301 : vector<8x128xf32>
    %303 = arith.mulf %302, %302 : vector<8x128xf32>
    %304 = arith.addf %297, %303 : vector<8x128xf32>
    %c14 = arith.constant 14 : index
    %c0_141 = arith.constant 0 : index
    %c0_142 = arith.constant 0 : index
    %305 = vector.load %arg1[%c14, %c0_141, %c0_142] : memref<30x8x128xf32, #tpu.memory_space<vmem>>, vector<1x8x128xf32>
    %306 = vector.shape_cast %305 : vector<1x8x128xf32> to vector<8x128xf32>
    %c14_143 = arith.constant 14 : index
    %c0_144 = arith.constant 0 : index
    %c0_145 = arith.constant 0 : index
    %307 = vector.load %arg2[%c14_143, %c0_144, %c0_145] : memref<30x8x128xf32, #tpu.memory_space<vmem>>, vector<1x8x128xf32>
    %308 = vector.shape_cast %307 : vector<1x8x128xf32> to vector<8x128xf32>
    %309 = arith.subf %306, %308 : vector<8x128xf32>
    %310 = arith.mulf %309, %309 : vector<8x128xf32>
    %311 = arith.addf %304, %310 : vector<8x128xf32>
    %c15 = arith.constant 15 : index
    %c0_146 = arith.constant 0 : index
    %c0_147 = arith.constant 0 : index
    %312 = vector.load %arg1[%c15, %c0_146, %c0_147] : memref<30x8x128xf32, #tpu.memory_space<vmem>>, vector<1x8x128xf32>
    %313 = vector.shape_cast %312 : vector<1x8x128xf32> to vector<8x128xf32>
    %c15_148 = arith.constant 15 : index
    %c0_149 = arith.constant 0 : index
    %c0_150 = arith.constant 0 : index
    %314 = vector.load %arg2[%c15_148, %c0_149, %c0_150] : memref<30x8x128xf32, #tpu.memory_space<vmem>>, vector<1x8x128xf32>
    %315 = vector.shape_cast %314 : vector<1x8x128xf32> to vector<8x128xf32>
    %316 = arith.subf %313, %315 : vector<8x128xf32>
    %317 = arith.mulf %316, %316 : vector<8x128xf32>
    %318 = arith.addf %311, %317 : vector<8x128xf32>
    %c16 = arith.constant 16 : index
    %c0_151 = arith.constant 0 : index
    %c0_152 = arith.constant 0 : index
    %319 = vector.load %arg1[%c16, %c0_151, %c0_152] : memref<30x8x128xf32, #tpu.memory_space<vmem>>, vector<1x8x128xf32>
    %320 = vector.shape_cast %319 : vector<1x8x128xf32> to vector<8x128xf32>
    %c16_153 = arith.constant 16 : index
    %c0_154 = arith.constant 0 : index
    %c0_155 = arith.constant 0 : index
    %321 = vector.load %arg2[%c16_153, %c0_154, %c0_155] : memref<30x8x128xf32, #tpu.memory_space<vmem>>, vector<1x8x128xf32>
    %322 = vector.shape_cast %321 : vector<1x8x128xf32> to vector<8x128xf32>
    %323 = arith.subf %320, %322 : vector<8x128xf32>
    %324 = arith.mulf %323, %323 : vector<8x128xf32>
    %325 = arith.addf %318, %324 : vector<8x128xf32>
    %c17 = arith.constant 17 : index
    %c0_156 = arith.constant 0 : index
    %c0_157 = arith.constant 0 : index
    %326 = vector.load %arg1[%c17, %c0_156, %c0_157] : memref<30x8x128xf32, #tpu.memory_space<vmem>>, vector<1x8x128xf32>
    %327 = vector.shape_cast %326 : vector<1x8x128xf32> to vector<8x128xf32>
    %c17_158 = arith.constant 17 : index
    %c0_159 = arith.constant 0 : index
    %c0_160 = arith.constant 0 : index
    %328 = vector.load %arg2[%c17_158, %c0_159, %c0_160] : memref<30x8x128xf32, #tpu.memory_space<vmem>>, vector<1x8x128xf32>
    %329 = vector.shape_cast %328 : vector<1x8x128xf32> to vector<8x128xf32>
    %330 = arith.subf %327, %329 : vector<8x128xf32>
    %331 = arith.mulf %330, %330 : vector<8x128xf32>
    %332 = arith.addf %325, %331 : vector<8x128xf32>
    %c18 = arith.constant 18 : index
    %c0_161 = arith.constant 0 : index
    %c0_162 = arith.constant 0 : index
    %333 = vector.load %arg1[%c18, %c0_161, %c0_162] : memref<30x8x128xf32, #tpu.memory_space<vmem>>, vector<1x8x128xf32>
    %334 = vector.shape_cast %333 : vector<1x8x128xf32> to vector<8x128xf32>
    %c18_163 = arith.constant 18 : index
    %c0_164 = arith.constant 0 : index
    %c0_165 = arith.constant 0 : index
    %335 = vector.load %arg2[%c18_163, %c0_164, %c0_165] : memref<30x8x128xf32, #tpu.memory_space<vmem>>, vector<1x8x128xf32>
    %336 = vector.shape_cast %335 : vector<1x8x128xf32> to vector<8x128xf32>
    %337 = arith.subf %334, %336 : vector<8x128xf32>
    %338 = arith.mulf %337, %337 : vector<8x128xf32>
    %339 = arith.addf %332, %338 : vector<8x128xf32>
    %c19 = arith.constant 19 : index
    %c0_166 = arith.constant 0 : index
    %c0_167 = arith.constant 0 : index
    %340 = vector.load %arg1[%c19, %c0_166, %c0_167] : memref<30x8x128xf32, #tpu.memory_space<vmem>>, vector<1x8x128xf32>
    %341 = vector.shape_cast %340 : vector<1x8x128xf32> to vector<8x128xf32>
    %c19_168 = arith.constant 19 : index
    %c0_169 = arith.constant 0 : index
    %c0_170 = arith.constant 0 : index
    %342 = vector.load %arg2[%c19_168, %c0_169, %c0_170] : memref<30x8x128xf32, #tpu.memory_space<vmem>>, vector<1x8x128xf32>
    %343 = vector.shape_cast %342 : vector<1x8x128xf32> to vector<8x128xf32>
    %344 = arith.subf %341, %343 : vector<8x128xf32>
    %345 = arith.mulf %344, %344 : vector<8x128xf32>
    %346 = arith.addf %339, %345 : vector<8x128xf32>
    %c20 = arith.constant 20 : index
    %c0_171 = arith.constant 0 : index
    %c0_172 = arith.constant 0 : index
    %347 = vector.load %arg1[%c20, %c0_171, %c0_172] : memref<30x8x128xf32, #tpu.memory_space<vmem>>, vector<1x8x128xf32>
    %348 = vector.shape_cast %347 : vector<1x8x128xf32> to vector<8x128xf32>
    %c20_173 = arith.constant 20 : index
    %c0_174 = arith.constant 0 : index
    %c0_175 = arith.constant 0 : index
    %349 = vector.load %arg2[%c20_173, %c0_174, %c0_175] : memref<30x8x128xf32, #tpu.memory_space<vmem>>, vector<1x8x128xf32>
    %350 = vector.shape_cast %349 : vector<1x8x128xf32> to vector<8x128xf32>
    %351 = arith.subf %348, %350 : vector<8x128xf32>
    %352 = arith.mulf %351, %351 : vector<8x128xf32>
    %353 = arith.addf %346, %352 : vector<8x128xf32>
    %c21 = arith.constant 21 : index
    %c0_176 = arith.constant 0 : index
    %c0_177 = arith.constant 0 : index
    %354 = vector.load %arg1[%c21, %c0_176, %c0_177] : memref<30x8x128xf32, #tpu.memory_space<vmem>>, vector<1x8x128xf32>
    %355 = vector.shape_cast %354 : vector<1x8x128xf32> to vector<8x128xf32>
    %c21_178 = arith.constant 21 : index
    %c0_179 = arith.constant 0 : index
    %c0_180 = arith.constant 0 : index
    %356 = vector.load %arg2[%c21_178, %c0_179, %c0_180] : memref<30x8x128xf32, #tpu.memory_space<vmem>>, vector<1x8x128xf32>
    %357 = vector.shape_cast %356 : vector<1x8x128xf32> to vector<8x128xf32>
    %358 = arith.subf %355, %357 : vector<8x128xf32>
    %359 = arith.mulf %358, %358 : vector<8x128xf32>
    %360 = arith.addf %353, %359 : vector<8x128xf32>
    %c22 = arith.constant 22 : index
    %c0_181 = arith.constant 0 : index
    %c0_182 = arith.constant 0 : index
    %361 = vector.load %arg1[%c22, %c0_181, %c0_182] : memref<30x8x128xf32, #tpu.memory_space<vmem>>, vector<1x8x128xf32>
    %362 = vector.shape_cast %361 : vector<1x8x128xf32> to vector<8x128xf32>
    %c22_183 = arith.constant 22 : index
    %c0_184 = arith.constant 0 : index
    %c0_185 = arith.constant 0 : index
    %363 = vector.load %arg2[%c22_183, %c0_184, %c0_185] : memref<30x8x128xf32, #tpu.memory_space<vmem>>, vector<1x8x128xf32>
    %364 = vector.shape_cast %363 : vector<1x8x128xf32> to vector<8x128xf32>
    %365 = arith.subf %362, %364 : vector<8x128xf32>
    %366 = arith.mulf %365, %365 : vector<8x128xf32>
    %367 = arith.addf %360, %366 : vector<8x128xf32>
    %c23 = arith.constant 23 : index
    %c0_186 = arith.constant 0 : index
    %c0_187 = arith.constant 0 : index
    %368 = vector.load %arg1[%c23, %c0_186, %c0_187] : memref<30x8x128xf32, #tpu.memory_space<vmem>>, vector<1x8x128xf32>
    %369 = vector.shape_cast %368 : vector<1x8x128xf32> to vector<8x128xf32>
    %c23_188 = arith.constant 23 : index
    %c0_189 = arith.constant 0 : index
    %c0_190 = arith.constant 0 : index
    %370 = vector.load %arg2[%c23_188, %c0_189, %c0_190] : memref<30x8x128xf32, #tpu.memory_space<vmem>>, vector<1x8x128xf32>
    %371 = vector.shape_cast %370 : vector<1x8x128xf32> to vector<8x128xf32>
    %372 = arith.subf %369, %371 : vector<8x128xf32>
    %373 = arith.mulf %372, %372 : vector<8x128xf32>
    %374 = arith.addf %367, %373 : vector<8x128xf32>
    %c24 = arith.constant 24 : index
    %c0_191 = arith.constant 0 : index
    %c0_192 = arith.constant 0 : index
    %375 = vector.load %arg1[%c24, %c0_191, %c0_192] : memref<30x8x128xf32, #tpu.memory_space<vmem>>, vector<1x8x128xf32>
    %376 = vector.shape_cast %375 : vector<1x8x128xf32> to vector<8x128xf32>
    %c24_193 = arith.constant 24 : index
    %c0_194 = arith.constant 0 : index
    %c0_195 = arith.constant 0 : index
    %377 = vector.load %arg2[%c24_193, %c0_194, %c0_195] : memref<30x8x128xf32, #tpu.memory_space<vmem>>, vector<1x8x128xf32>
    %378 = vector.shape_cast %377 : vector<1x8x128xf32> to vector<8x128xf32>
    %379 = arith.subf %376, %378 : vector<8x128xf32>
    %380 = arith.mulf %379, %379 : vector<8x128xf32>
    %381 = arith.addf %374, %380 : vector<8x128xf32>
    %c25 = arith.constant 25 : index
    %c0_196 = arith.constant 0 : index
    %c0_197 = arith.constant 0 : index
    %382 = vector.load %arg1[%c25, %c0_196, %c0_197] : memref<30x8x128xf32, #tpu.memory_space<vmem>>, vector<1x8x128xf32>
    %383 = vector.shape_cast %382 : vector<1x8x128xf32> to vector<8x128xf32>
    %c25_198 = arith.constant 25 : index
    %c0_199 = arith.constant 0 : index
    %c0_200 = arith.constant 0 : index
    %384 = vector.load %arg2[%c25_198, %c0_199, %c0_200] : memref<30x8x128xf32, #tpu.memory_space<vmem>>, vector<1x8x128xf32>
    %385 = vector.shape_cast %384 : vector<1x8x128xf32> to vector<8x128xf32>
    %386 = arith.subf %383, %385 : vector<8x128xf32>
    %387 = arith.mulf %386, %386 : vector<8x128xf32>
    %388 = arith.addf %381, %387 : vector<8x128xf32>
    %c26 = arith.constant 26 : index
    %c0_201 = arith.constant 0 : index
    %c0_202 = arith.constant 0 : index
    %389 = vector.load %arg1[%c26, %c0_201, %c0_202] : memref<30x8x128xf32, #tpu.memory_space<vmem>>, vector<1x8x128xf32>
    %390 = vector.shape_cast %389 : vector<1x8x128xf32> to vector<8x128xf32>
    %c26_203 = arith.constant 26 : index
    %c0_204 = arith.constant 0 : index
    %c0_205 = arith.constant 0 : index
    %391 = vector.load %arg2[%c26_203, %c0_204, %c0_205] : memref<30x8x128xf32, #tpu.memory_space<vmem>>, vector<1x8x128xf32>
    %392 = vector.shape_cast %391 : vector<1x8x128xf32> to vector<8x128xf32>
    %393 = arith.subf %390, %392 : vector<8x128xf32>
    %394 = arith.mulf %393, %393 : vector<8x128xf32>
    %395 = arith.addf %388, %394 : vector<8x128xf32>
    %c27 = arith.constant 27 : index
    %c0_206 = arith.constant 0 : index
    %c0_207 = arith.constant 0 : index
    %396 = vector.load %arg1[%c27, %c0_206, %c0_207] : memref<30x8x128xf32, #tpu.memory_space<vmem>>, vector<1x8x128xf32>
    %397 = vector.shape_cast %396 : vector<1x8x128xf32> to vector<8x128xf32>
    %c27_208 = arith.constant 27 : index
    %c0_209 = arith.constant 0 : index
    %c0_210 = arith.constant 0 : index
    %398 = vector.load %arg2[%c27_208, %c0_209, %c0_210] : memref<30x8x128xf32, #tpu.memory_space<vmem>>, vector<1x8x128xf32>
    %399 = vector.shape_cast %398 : vector<1x8x128xf32> to vector<8x128xf32>
    %400 = arith.subf %397, %399 : vector<8x128xf32>
    %401 = arith.mulf %400, %400 : vector<8x128xf32>
    %402 = arith.addf %395, %401 : vector<8x128xf32>
    %c28 = arith.constant 28 : index
    %c0_211 = arith.constant 0 : index
    %c0_212 = arith.constant 0 : index
    %403 = vector.load %arg1[%c28, %c0_211, %c0_212] : memref<30x8x128xf32, #tpu.memory_space<vmem>>, vector<1x8x128xf32>
    %404 = vector.shape_cast %403 : vector<1x8x128xf32> to vector<8x128xf32>
    %c28_213 = arith.constant 28 : index
    %c0_214 = arith.constant 0 : index
    %c0_215 = arith.constant 0 : index
    %405 = vector.load %arg2[%c28_213, %c0_214, %c0_215] : memref<30x8x128xf32, #tpu.memory_space<vmem>>, vector<1x8x128xf32>
    %406 = vector.shape_cast %405 : vector<1x8x128xf32> to vector<8x128xf32>
    %407 = arith.subf %404, %406 : vector<8x128xf32>
    %408 = arith.mulf %407, %407 : vector<8x128xf32>
    %409 = arith.addf %402, %408 : vector<8x128xf32>
    %c29 = arith.constant 29 : index
    %c0_216 = arith.constant 0 : index
    %c0_217 = arith.constant 0 : index
    %410 = vector.load %arg1[%c29, %c0_216, %c0_217] : memref<30x8x128xf32, #tpu.memory_space<vmem>>, vector<1x8x128xf32>
    %411 = vector.shape_cast %410 : vector<1x8x128xf32> to vector<8x128xf32>
    %c29_218 = arith.constant 29 : index
    %c0_219 = arith.constant 0 : index
    %c0_220 = arith.constant 0 : index
    %412 = vector.load %arg2[%c29_218, %c0_219, %c0_220] : memref<30x8x128xf32, #tpu.memory_space<vmem>>, vector<1x8x128xf32>
    %413 = vector.shape_cast %412 : vector<1x8x128xf32> to vector<8x128xf32>
    %414 = arith.subf %411, %413 : vector<8x128xf32>
    %415 = arith.mulf %414, %414 : vector<8x128xf32>
    %416 = arith.addf %409, %415 : vector<8x128xf32>
    %c4_221 = arith.constant 4 : index
    %c0_222 = arith.constant 0 : index
    %c0_223 = arith.constant 0 : index
    %417 = vector.load %arg1[%c4_221, %c0_222, %c0_223] : memref<30x8x128xf32, #tpu.memory_space<vmem>>, vector<1x8x128xf32>
    %418 = vector.shape_cast %417 : vector<1x8x128xf32> to vector<8x128xf32>
    %c4_224 = arith.constant 4 : index
    %c0_225 = arith.constant 0 : index
    %c0_226 = arith.constant 0 : index
    %419 = vector.load %arg2[%c4_224, %c0_225, %c0_226] : memref<30x8x128xf32, #tpu.memory_space<vmem>>, vector<1x8x128xf32>
    %420 = vector.shape_cast %419 : vector<1x8x128xf32> to vector<8x128xf32>
    %421 = arith.subf %418, %420 : vector<8x128xf32>
    %422 = arith.mulf %421, %421 : vector<8x128xf32>
    %c9_227 = arith.constant 9 : index
    %c0_228 = arith.constant 0 : index
    %c0_229 = arith.constant 0 : index
    %423 = vector.load %arg1[%c9_227, %c0_228, %c0_229] : memref<30x8x128xf32, #tpu.memory_space<vmem>>, vector<1x8x128xf32>
    %424 = vector.shape_cast %423 : vector<1x8x128xf32> to vector<8x128xf32>
    %c9_230 = arith.constant 9 : index
    %c0_231 = arith.constant 0 : index
    %c0_232 = arith.constant 0 : index
    %425 = vector.load %arg2[%c9_230, %c0_231, %c0_232] : memref<30x8x128xf32, #tpu.memory_space<vmem>>, vector<1x8x128xf32>
    %426 = vector.shape_cast %425 : vector<1x8x128xf32> to vector<8x128xf32>
    %427 = arith.subf %424, %426 : vector<8x128xf32>
    %428 = arith.mulf %427, %427 : vector<8x128xf32>
    %429 = arith.addf %422, %428 : vector<8x128xf32>
    %430 = arith.addf %262, %275 : vector<8x128xf32>
    %cst_233 = arith.constant 5.000000e+00 : f32
    %431 = vector.broadcast %cst_233 : f32 to vector<8x128xf32>
    %432 = arith.mulf %431, %430 : vector<8x128xf32>
    %433 = arith.addf %432, %277 : vector<8x128xf32>
    %434 = arith.addf %433, %416 : vector<8x128xf32>
    %cst_234 = arith.constant 0.000000e+00 : f32
    %435 = vector.broadcast %cst_234 : f32 to vector<8x128xf32>
    %436 = arith.select %35, %434, %435 : vector<8x128xi1>, vector<8x128xf32>
    %cst_235 = arith.constant 5.000000e-01 : f32
    %437 = vector.broadcast %cst_235 : f32 to vector<8x128xf32>
    %438 = arith.mulf %437, %429 : vector<8x128xf32>
    %cst_236 = arith.constant 0.000000e+00 : f32
    %439 = vector.broadcast %cst_236 : f32 to vector<8x128xf32>
    %440 = arith.select %38, %438, %439 : vector<8x128xi1>, vector<8x128xf32>
    %441 = arith.addf %436, %440 : vector<8x128xf32>
    %c0_237 = arith.constant 0 : index
    %442 = memref.load %arg4[%c0_237] : memref<1xf32, #tpu.memory_space<smem>>
    %443 = vector.shape_cast %441 : vector<8x128xf32> to vector<1x8x128xf32>
    %cst_238 = arith.constant dense<0.000000e+00> : vector<1xf32>
    %444 = vector.multi_reduction <add>, %443, %cst_238 [1, 2] : vector<1x8x128xf32> to vector<1xf32>
    %445 = vector.shape_cast %444 : vector<1xf32> to vector<1x1x1xf32>
    %446 = vector.extract %445[0, 0, 0] : f32 from vector<1x1x1xf32>
    %447 = arith.addf %442, %446 : f32
    %c0_239 = arith.constant 0 : index
    %448 = memref.load %arg4[%c0_239] : memref<1xf32, #tpu.memory_space<smem>>
    memref.store %447, %arg4[%c0_239] : memref<1xf32, #tpu.memory_space<smem>>
    %c0_i32_240 = arith.constant 0 : i32
    %449 = arith.cmpi eq, %arg0, %c0_i32_240 : i32
    %450 = arith.extui %449 : i1 to i32
    %c0_i32_241 = arith.constant 0 : i32
    %451 = arith.cmpi ne, %450, %c0_i32_241 : i32
    scf.if %451 {
      %c0_242 = arith.constant 0 : index
      %452 = memref.load %arg4[%c0_242] : memref<1xf32, #tpu.memory_space<smem>>
      %cst_243 = arith.constant 2.000000e+00 : f32
      %453 = arith.divf %452, %cst_243 : f32
      %c0_244 = arith.constant 0 : index
      %c0_245 = arith.constant 0 : index
      %454 = memref.load %arg3[%c0_244, %c0_245] : memref<1x1xf32, #tpu.memory_space<smem>>
      memref.store %453, %arg3[%c0_244, %c0_245] : memref<1x1xf32, #tpu.memory_space<smem>>
    } else {
    }
    return
  }
  func.func @transform_0(%arg0: i32) -> (i32, i32, i32) {
    %c0_i32 = arith.constant 0 : i32
    %c0_i32_0 = arith.constant 0 : i32
    %c0_i32_1 = arith.constant 0 : i32
    return %c0_i32, %arg0, %c0_i32_0 : i32, i32, i32
  }
  func.func @transform_1(%arg0: i32) -> (i32, i32, i32) {
    %c0_i32 = arith.constant 0 : i32
    %c0_i32_0 = arith.constant 0 : i32
    %c0_i32_1 = arith.constant 0 : i32
    return %c0_i32, %arg0, %c0_i32_0 : i32, i32, i32
  }
  func.func @transform_2(%arg0: i32) -> (i32, i32) {
    %c0_i32 = arith.constant 0 : i32
    %c0_i32_0 = arith.constant 0 : i32
    %c0_i32_1 = arith.constant 0 : i32
    return %c0_i32, %c0_i32_0 : i32, i32
  }
}

</mosaic_0001>

<bundles_post_ra>
// kernel: tpu_custom_call.1
= control target key start
LH: loop header
LB: loop body
LE: loop exit
PB: predicated region body
PF: predicated region fallthrough
CT: control target
= control target key end

     0   :  { %7 = vsyncpa [#allocation4], 0  ;;  %s738_s0 = inlined_call_operand.hbm [shape: f32[30,8,128], index: 0, kind: input, shape index: {}]   ;;  %s739_s1 = inlined_call_operand.hbm [shape: f32[30,8,128], index: 1, kind: input, shape index: {}]   ;;  %s740_s2 = inlined_call_operand.hbm [shape: f32[1,1], index: 2, kind: output, shape index: {}]  }
   0x1   :  { %8 = vsyncpa [#allocation7], 0 }
   0x2   :  { %9 = vsyncpa [#allocation5], 0  ;;  %s538_s9 = smov [#allocation3]   ;;  %s478_s13 = scalar_lea.hbm %s738_s0, 3840 }
   0x3   :  { %s15_s10 = sshll.u32 %s538_s9, 4  ;;  %p479_p0 = scmp.ne.s32.totalorder %s738_s0, %s478_s13  ;;  %s16_s10 = int_to_ptr.vmem [resolvable:$true] %s15_s10 }
   0x4   :  { %p482_p1 = scmp.lt.u32.totalorder %s478_s13, %s738_s0 }
   0x6   :  { %p484_p2 = pnand %p482_p1, %p479_p0 }
   0x8   :  { %487 = shalt.err (!%p484_p2)
}
   0x9   :  { %s488_s18 = scalar_lea.vmem %s16_s10, 3840  ;;  %p493_p4 = scmp.lt.s32.totalorder %s16_s10, %s16_s10 }
   0xa   :  { %p489_p3 = scmp.ne.s32.totalorder %s16_s10, %s488_s18  ;;  %p494_p5 = scmp.lt.s32.totalorder %s488_s18, %s488_s18 }
   0xc   :  { %p495_p6 = por %p494_p5, %p493_p4 }
   0xe   :  { %p496_p7 = pnand %p495_p6, %p489_p3 }
  0x10   :  { %499 = shalt.err (!%p496_p7)
}
  0x11   :  { %s539_s19 = smov 128   ;;  %s540_s20 = smov 8  }
  0x12   :  { %21 = dma.hbm_to_vmem [thread:$0]  %s738_s0, 3840, %s16_s10, [#allocation4], %s539_s19, %s539_s19, %s540_s20  }
  0x13   :  { %s541_s23 = smov [#allocation6]   ;;  %s500_s27 = scalar_lea.hbm %s739_s1, 3840 }
  0x14   :  { %s27_s24 = sshll.u32 %s541_s23, 4  ;;  %p501_p8 = scmp.ne.s32.totalorder %s739_s1, %s500_s27  ;;  %s28_s24 = int_to_ptr.vmem [resolvable:$true] %s27_s24 }
  0x15   :  { %p504_p9 = scmp.lt.u32.totalorder %s500_s27, %s739_s1 }
  0x17   :  { %p506_p10 = pnand %p504_p9, %p501_p8 }
  0x19   :  { %509 = shalt.err (!%p506_p10)
}
  0x1a   :  { %s510_s4 = scalar_lea.vmem %s28_s24, 3840  ;;  %p515_p12 = scmp.lt.s32.totalorder %s28_s24, %s28_s24 }
  0x1b   :  { %p511_p11 = scmp.ne.s32.totalorder %s28_s24, %s510_s4  ;;  %p516_p13 = scmp.lt.s32.totalorder %s510_s4, %s510_s4 }
  0x1d   :  { %p517_p0 = por %p516_p13, %p515_p12 }
  0x1f   :  { %p518_p1 = pnand %p517_p0, %p511_p11 }
  0x21   :  { %521 = shalt.err (!%p518_p1)
}
  0x22   :  { %33 = dma.hbm_to_vmem [thread:$0]  %s739_s1, 3840, %s28_s24, [#allocation7], %s539_s19, %s539_s19, %s540_s20  }
  0x23   :  { %532 = dma.done.wait [#allocation4], 3840  }
  0x24   :  { %533 = vsyncadd [#allocation4], 4294963456 }
  0x25   :  { %534 = dma.done.wait [#allocation7], 3840  }
  0x26   :  { %535 = vsyncadd [#allocation7], 4294963456  ;;  %v46_v0 = vlaneseq  ;;  %v269_v10 = vld [vmem:[#allocation3 + $0x50] sm:$0xff]  ;;  %v271_v11 = vld [vmem:[#allocation6 + $0x50] sm:$0xff]  ;;  %s522_s9 = scalar_lea.hbm %s740_s2, 16 }
  0x27   :  { %v275_v12 = vld [vmem:[#allocation3 + $0x58] sm:$0xff]  ;;  %v277_v13 = vld [vmem:[#allocation6 + $0x58] sm:$0xff]  ;;  %v272_v15 = vsub.f32 %v269_v10, %v271_v11  ;;  %v282_v18 = vld [vmem:[#allocation3 + $0x60] sm:$0xff]  ;;  %p523_p2 = scmp.ne.s32.totalorder %s740_s2, %s522_s9  ;;  %p526_p3 = scmp.lt.u32.totalorder %s522_s9, %s740_s2 }
  0x28   :  { %v47_v1 = vshrl.u32 %v46_v0, 7  ;;  %v50_v2 = vand.u32 127, %v46_v0  ;;  %v278_v16 = vsub.f32 %v275_v12, %v277_v13  ;;  %v284_v19 = vld [vmem:[#allocation6 + $0x60] sm:$0xff]  ;;  %v289_v21 = vld [vmem:[#allocation3 + $0x68] sm:$0xff]  ;;  %v291_v22 = vld [vmem:[#allocation6 + $0x68] sm:$0xff] }
  0x29   :  { %v586_v23 = vld [vmem:[#allocation6 + $0x10] sm:$0xff]  ;;  %v588_v24 = vld [vmem:[#allocation6 + $0x18] sm:$0xff]  ;;  %v273_v25 = vmul.f32 %v272_v15, %v272_v15  ;;  %v285_v27 = vsub.f32 %v282_v18, %v284_v19  ;;  %v590_v29 = vld [vmem:[#allocation3 + $0x10] sm:$0xff]  ;;  %v292_v35 = vsub.f32 %v289_v21, %v291_v22  ;;  %p528_p4 = pnand %p526_p3, %p523_p2 }
  0x2a   :  { %v48_v3 = vcvt.s32.f32 %v47_v1  ;;  %v51_v4 = vcvt.s32.f32 %v50_v2  ;;  %v279_v26 = vmul.f32 %v278_v16, %v278_v16  ;;  %v296_v30 = vld [vmem:[#allocation3 + $0x70] sm:$0xff]  ;;  %v298_v31 = vld [vmem:[#allocation6 + $0x70] sm:$0xff]  ;;  %v150_v34 = vld [vmem:[#allocation3 + $0x28] sm:$0xff]  ;;  %v87_v37 = vmul.f32 0.5, %v586_v23 }
  0x2b   :  { %v76_v32 = vld [vmem:[#allocation6] sm:$0xff]  ;;  %v104_v33 = vld [vmem:[#allocation3] sm:$0xff]  ;;  %v91_v38 = vmul.f32 0.5, %v588_v24  ;;  %v594_v39 = vld [vmem:[#allocation3 + $0x18] sm:$0xff]  ;;  %v117_v42 = vmul.f32 0.5, %v590_v29  ;;  %v286_v44 = vmul.f32 %v285_v27, %v285_v27  ;;  %v299_v45 = vsub.f32 %v296_v30, %v298_v31 }
  0x2c   :  { %v54_v5 = vmul.f32 128.0, %v48_v3  ;;  %v596_v40 = vld [vmem:[#allocation3 + $0x38] sm:$0xff]  ;;  %v598_v41 = vld [vmem:[#allocation3 + $0x40] sm:$0xff]  ;;  %v280_v43 = vadd.f32 %v279_v26, %v273_v25  ;;  %v305_v51 = vld [vmem:[#allocation6 + $0x78] sm:$0xff]  ;;  %v121_v56 = vmul.f32 0.5, %v594_v39  ;;  %v293_v60 = vmul.f32 %v292_v35, %v292_v35 }
  0x2d   :  { %v303_v46 = vld [vmem:[#allocation3 + $0x78] sm:$0xff]  ;;  %v310_v52 = vld [vmem:[#allocation3 + $0x80] sm:$0xff]  ;;  %v312_v53 = vld [vmem:[#allocation6 + $0x80] sm:$0xff]  ;;  %v163_v58 = vmul.f32 0.5, %v596_v40  ;;  %v167_v59 = vmul.f32 0.5, %v598_v41  ;;  %v300_v2 = vmul.f32 %v299_v45, %v299_v45 }
  0x2e   :  { %v582_v6 = vadd.f32 %v54_v5, %v51_v4  ;;  %v80_v54 = vld [vmem:[#allocation6 + $0x8] sm:$0xff]  ;;  %v108_v55 = vld [vmem:[#allocation3 + $0x8] sm:$0xff]  ;;  %v154_v57 = vld [vmem:[#allocation3 + $0x30] sm:$0xff]  ;;  %v287_v1 = vadd.f32 %v286_v44, %v280_v43  ;;  %v306_v3 = vsub.f32 %v303_v46, %v305_v51  ;;  %v610_v4 = vsub.f32 %v310_v52, %v312_v53 }
  0x30   :  { %v59_v7 = vadd.f32 0.5, %v582_v6  ;;  %v294_v21 = vadd.f32 %v293_v60, %v287_v1  ;;  %vm58_vm12 = vcmp.lt.f32.partialorder %v582_v6, 98.0 }
  0x32   :  { %v61_v8 = vmul.f32 0.020408163, %v59_v7 }
  0x34   :  { %v62_v9 = vfloor.f32 %v61_v8 }
  0x36   :  { %v63_v14 = vmul.f32 49.0, %v62_v9 }
  0x38   :  { %v64_v17 = vsub.f32 %v582_v6, %v63_v14 }
  0x3a   :  { %v65_v20 = vadd.f32 0.5, %v64_v17 }
  0x3c   :  { %v67_v28 = vmul.f32 0.14285715, %v65_v20 }
  0x3e   :  { %v68_v36 = vfloor.f32 %v67_v28 }
  0x40   :  { %v69_v47 = vmul.f32 7.0, %v68_v36  ;;  %v77_v48 = vadd.f32 %v76_v32, %v68_v36  ;;  %v105_v49 = vadd.f32 %v104_v33, %v68_v36  ;;  %v151_v50 = vadd.f32 %v150_v34, %v68_v36 }
  0x42   :  { %v70_v61 = vsub.f32 %v64_v17, %v69_v47  ;;  %v604_v62 = vmul.f32 0.14285715, %v77_v48  ;;  %v606_v63 = vmul.f32 0.14285715, %v105_v49  ;;  %v608_v0 = vmul.f32 0.14285715, %v151_v50 }
  0x44   :  { %v81_v5 = vadd.f32 %v80_v54, %v70_v61  ;;  %v88_v7 = vsub.f32 %v604_v62, %v87_v37  ;;  %v95_v8 = vadd.f32 %v87_v37, %v604_v62  ;;  %v109_v9 = vadd.f32 %v108_v55, %v70_v61 }
  0x45   :  { %v118_v10 = vsub.f32 %v606_v63, %v117_v42  ;;  %v125_v11 = vadd.f32 %v117_v42, %v606_v63  ;;  %v155_v12 = vadd.f32 %v154_v57, %v70_v61  ;;  %v164_v13 = vsub.f32 %v608_v0, %v163_v58 }
  0x46   :  { %v617_v14 = vmul.f32 0.14285715, %v81_v5  ;;  %v89_v15 = vmax.f32 %v88_v7, 0.0  ;;  %v96_v16 = vmax.f32 %v95_v8, 0.0  ;;  %v619_v17 = vmul.f32 0.14285715, %v109_v9 }
  0x47   :  { %v119_v18 = vmax.f32 %v118_v10, 0.0  ;;  %v126_v19 = vmax.f32 %v125_v11, 0.0  ;;  %v621_v20 = vmul.f32 0.14285715, %v155_v12  ;;  %v165_v36 = vmax.f32 %v164_v13, 0.0 }
  0x48   :  { %v90_v22 = vmin.f32 %v89_v15, 1.0  ;;  %v92_v25 = vsub.f32 %v617_v14, %v91_v38  ;;  %v97_v26 = vmin.f32 %v96_v16, 1.0  ;;  %v98_v27 = vadd.f32 %v91_v38, %v617_v14 }
  0x49   :  { %v120_v28 = vmin.f32 %v119_v18, 1.0  ;;  %v122_v30 = vsub.f32 %v619_v17, %v121_v56  ;;  %v127_v31 = vmin.f32 %v126_v19, 1.0  ;;  %v128_v32 = vadd.f32 %v121_v56, %v619_v17  ;;  %v317_v18 = vld [vmem:[#allocation3 + $0x88] sm:$0xff]  ;;  %v319_v19 = vld [vmem:[#allocation6 + $0x88] sm:$0xff] }
  0x4a   :  { %v93_v33 = vmax.f32 %v92_v25, 0.0  ;;  %v99_v34 = vmax.f32 %v98_v27, 0.0  ;;  %v101_v35 = vsub.f32 %v97_v26, %v90_v22  ;;  %v168_v48 = vsub.f32 %v621_v20, %v167_v59 }
  0x4b   :  { %v123_v37 = vmax.f32 %v122_v30, 0.0  ;;  %v129_v42 = vmax.f32 %v128_v32, 0.0  ;;  %v131_v43 = vmin.f32 %v127_v31, %v97_v26  ;;  %v132_v44 = vmax.f32 %v120_v28, %v90_v22 }
  0x4c   :  { %v94_v45 = vmin.f32 %v93_v33, 1.0  ;;  %v100_v46 = vmin.f32 %v99_v34, 1.0  ;;  %v140_v47 = vsub.f32 %v127_v31, %v120_v28  ;;  %v171_v51 = vadd.f32 %v163_v58, %v608_v0 }
  0x4d   :  { %v124_v38 = vmin.f32 %v123_v37, 1.0  ;;  %v130_v49 = vmin.f32 %v129_v42, 1.0  ;;  %v133_v50 = vsub.f32 %v131_v43, %v132_v44  ;;  %v166_v53 = vmin.f32 %v165_v36, 1.0  ;;  %v324_v36 = vld [vmem:[#allocation3 + $0x90] sm:$0xff] }
  0x4e   :  { %v102_v52 = vsub.f32 %v100_v46, %v94_v45  ;;  %v169_v54 = vmax.f32 %v168_v48, 0.0  ;;  %v174_v55 = vadd.f32 %v167_v59, %v621_v20  ;;  %v307_v61 = vmul.f32 %v306_v3, %v306_v3 }
  0x4f   :  { %v135_v56 = vmin.f32 %v130_v49, %v100_v46  ;;  %v136_v57 = vmax.f32 %v124_v38, %v94_v45  ;;  %v141_v60 = vsub.f32 %v130_v49, %v124_v38  ;;  %v172_v7 = vmax.f32 %v171_v51, 0.0  ;;  %v331_v38 = vld [vmem:[#allocation3 + $0x98] sm:$0xff]  ;;  %v333_v49 = vld [vmem:[#allocation6 + $0x98] sm:$0xff] }
  0x50   :  { %v103_v1 = vmul.f32 %v102_v52, %v101_v35  ;;  %v170_v5 = vmin.f32 %v169_v54, 1.0  ;;  %v175_v8 = vmax.f32 %v174_v55, 0.0  ;;  %v134_v9 = vmax.f32 %v133_v50, 0.0  ;;  %v340_v54 = vld [vmem:[#allocation6 + $0xa0] sm:$0xff] }
  0x51   :  { %v137_v10 = vsub.f32 %v135_v56, %v136_v57  ;;  %v142_v11 = vmul.f32 %v141_v60, %v140_v47  ;;  %v301_v12 = vadd.f32 %v300_v2, %v294_v21  ;;  %v173_v13 = vmin.f32 %v172_v7, 1.0 }
  0x52   :  { %v176_v15 = vmin.f32 %v175_v8, 1.0  ;;  %v178_v58 = vmax.f32 %v166_v53, %v90_v22  ;;  %v182_v16 = vmax.f32 %v170_v5, %v94_v45  ;;  %v314_v33 = vmul.f32 %v610_v4, %v610_v4  ;;  %v326_v22 = vld [vmem:[#allocation6 + $0x90] sm:$0xff] }
  0x53   :  { %v138_v25 = vmax.f32 %v137_v10, 0.0  ;;  %v143_v59 = vadd.f32 %v142_v11, %v103_v1  ;;  %v177_v27 = vmin.f32 %v173_v13, %v97_v26  ;;  %v186_v30 = vsub.f32 %v173_v13, %v166_v53  ;;  %v338_v53 = vld [vmem:[#allocation3 + $0xa0] sm:$0xff]  ;;  %v352_v10 = vld [vmem:[#allocation3 + $0xb0] sm:$0xff] }
  0x54   :  { %v181_v28 = vmin.f32 %v176_v15, %v100_v46  ;;  %v187_v3 = vsub.f32 %v176_v15, %v170_v5  ;;  %v308_v32 = vadd.f32 %v307_v61, %v301_v12  ;;  %v320_v34 = vsub.f32 %v317_v18, %v319_v19  ;;  %v345_v61 = vld [vmem:[#allocation3 + $0xa8] sm:$0xff]  ;;  %v354_v11 = vld [vmem:[#allocation6 + $0xb0] sm:$0xff] }
  0x55   :  { %v139_v31 = vmul.f32 %v138_v25, %v134_v9  ;;  %v179_v35 = vsub.f32 %v177_v27, %v178_v58  ;;  %v327_v46 = vsub.f32 %v324_v36, %v326_v22  ;;  %v334_v52 = vsub.f32 %v331_v38, %v333_v49  ;;  %v361_v18 = vld [vmem:[#allocation6 + $0xb8] sm:$0xff]  ;;  %v387_v38 = vld [vmem:[#allocation3 + $0xd8] sm:$0xff] }
  0x56   :  { %v183_v2 = vsub.f32 %v181_v28, %v182_v16  ;;  %v188_v21 = vmul.f32 %v187_v3, %v186_v30  ;;  %v315_v26 = vadd.f32 %v314_v33, %v308_v32  ;;  %v321_v45 = vmul.f32 %v320_v34, %v320_v34  ;;  %v359_v16 = vld [vmem:[#allocation3 + $0xb8] sm:$0xff]  ;;  %v211_v30 = vld [vmem:[#allocation6 + $0x38] sm:$0xff]  ;;  %v366_v32 = vld [vmem:[#allocation3 + $0xc0] sm:$0xff] }
  0x57   :  { %v144_v37 = vsub.f32 %v143_v59, %v139_v31  ;;  %v180_v42 = vmax.f32 %v179_v35, 0.0  ;;  %v328_v51 = vmul.f32 %v327_v46, %v327_v46  ;;  %v335_v57 = vmul.f32 %v334_v52, %v334_v52  ;;  %v636_v59 = vld [vmem:[#allocation6 + $0x20] sm:$0xff]  ;;  %v389_v49 = vld [vmem:[#allocation6 + $0xd8] sm:$0xff]  ;;  %v205_v52 = vld [vmem:[#allocation6 + $0x28] sm:$0xff] }
  0x58   :  { %v184_v43 = vmax.f32 %v183_v2, 0.0  ;;  %v189_v44 = vadd.f32 %v188_v21, %v103_v1  ;;  %v322_v50 = vadd.f32 %v321_v45, %v315_v26  ;;  %v341_v60 = vsub.f32 %v338_v53, %v340_v54  ;;  %v347_v1 = vld [vmem:[#allocation6 + $0xa8] sm:$0xff]  ;;  %v368_v33 = vld [vmem:[#allocation6 + $0xc0] sm:$0xff]  ;;  %v208_v53 = vld [vmem:[#allocation6 + $0x30] sm:$0xff] }
  0x59   :  { %vm145_vm0 = vcmp.gt.f32.partialorder %v144_v37, 0.0  ;;  %v348_v8 = vsub.f32 %v345_v61, %v347_v1  ;;  %v355_v58 = vsub.f32 %v352_v10, %v354_v11  ;;  %v362_v27 = vsub.f32 %v359_v16, %v361_v18  ;;  %v214_v35 = vld [vmem:[#allocation6 + $0x40] sm:$0xff]  ;;  %v410_v1 = vld [vmem:[#allocation6 + $0x48] sm:$0xff] }
  0x5a   :  { %v146_v47 = vsel %vm145_vm0, %v144_v37, 1.0  ;;  %v185_v48 = vmul.f32 %v184_v43, %v180_v42  ;;  %v329_v56 = vadd.f32 %v328_v51, %v322_v50  ;;  %v342_v7 = vmul.f32 %v341_v60, %v341_v60  ;;  %v162_v50 = vld [vmem:[#allocation3 + $0x48] sm:$0xff]  ;;  %v394_v60 = vld [vmem:[#allocation3 + $0xe0] sm:$0xff]  ;;  %v396_v61 = vld [vmem:[#allocation6 + $0xe0] sm:$0xff] }
  0x5b   :  { %466 = vrcp.f32 %v146_v47  ;;  %v349_v15 = vmul.f32 %v348_v8, %v348_v8  ;;  %vm73_vm3 = vcmp.gt.f32.partialorder %v636_v59, 0.0  ;;  %v363_v36 = vmul.f32 %v362_v27, %v362_v27 }
  0x5c   :  { %v190_v4 = vsub.f32 %v189_v44, %v185_v48  ;;  %v336_v5 = vadd.f32 %v335_v57, %v329_v56  ;;  %v369_v22 = vsub.f32 %v366_v32, %v368_v33  ;;  %v411_v16 = vsub.f32 %v162_v50, %v410_v1 }
  0x5d   :  { %vm74_vm13 = vcmp.eq.f32.partialorder %v636_v59, 0.0 }
  0x5e   :  { %vm191_vm1 = vcmp.gt.f32.partialorder %v190_v4, 0.0  ;;  %v343_v13 = vadd.f32 %v342_v7, %v336_v5  ;;  %v370_v46 = vmul.f32 %v369_v22, %v369_v22  ;;  %vm75_vm14 = vmand %vm74_vm13, %vm58_vm12 }
  0x5f   :  { %v192_v55 = vsel %vm191_vm1, %v190_v4, 1.0 }
  0x60   :  { %468 = vrcp.f32 %v192_v55  ;;  %v350_v3 = vadd.f32 %v349_v15, %v343_v13  ;;  %v390_v55 = vsub.f32 %v387_v38, %v389_v49 }
  0x62   :  { %v391_v15 = vmul.f32 %v390_v55, %v390_v55 }
  0x65   :  { %v467_v9 = vpop.eup %466 }
  0x66   :  { %v632_v12 = vmul.f32 %v467_v9, %v139_v31  ;;  %v356_v31 = vmul.f32 %v355_v58, %v355_v58  ;;  %v397_v58 = vsub.f32 %v394_v60, %v396_v61 }
  0x6a   :  { %v469_v19 = vpop.eup %468 }
  0x6b   :  { %v634_v25 = vmul.f32 %v469_v19, %v185_v48  ;;  %v382_v48 = vld [vmem:[#allocation6 + $0xd0] sm:$0xff] }
  0x6d   :  { %vm640_vm2 = vcmp.gt.f32.partialorder %v634_v25, %v632_v12 }
  0x6e   :  { %v201_v34 = vsel %vm640_vm2, %v596_v40, %v590_v29  ;;  %v202_v2 = vsel %vm640_vm2, %v598_v41, %v594_v39  ;;  %v212_v21 = vsel %vm640_vm2, %v211_v30, %v586_v23  ;;  %v215_v37 = vsel %vm640_vm2, %v214_v35, %v588_v24  ;;  %v373_v41 = vld [vmem:[#allocation3 + $0xc8] sm:$0xff]  ;;  %v375_v23 = vld [vmem:[#allocation6 + $0xc8] sm:$0xff] }
  0x6f   :  { %v220_v42 = vmax.f32 %v201_v34, 1e-06  ;;  %v222_v29 = vmax.f32 %v202_v2, 1e-06  ;;  %v357_v40 = vadd.f32 %v356_v31, %v350_v3  ;;  %v199_v43 = vsel %vm640_vm2, %v608_v0, %v606_v63  ;;  %v380_v0 = vld [vmem:[#allocation3 + $0xd0] sm:$0xff] }
  0x70   :  { %v665_v39 = vsel %vm73_vm3, %v212_v21, 0.0  ;;  %v200_v44 = vsel %vm640_vm2, %v621_v20, %v619_v17  ;;  %v678_v63 = vsel %vm73_vm3, %v215_v37, 0.0  ;;  %v376_v47 = vsub.f32 %v373_v41, %v375_v23  ;;  %v116_v17 = vld [vmem:[#allocation3 + $0x20] sm:$0xff] }
  0x71   :  { %v671_v24 = vmin.f32 %v220_v42, 0.999999  ;;  %v673_v26 = vmin.f32 %v222_v29, 0.999999  ;;  %470 = vrsqrt.f32 %v665_v39  ;;  %v364_v45 = vadd.f32 %v363_v36, %v357_v40 }
  0x72   :  { %v216_v20 = vmax.f32 %v199_v43, 1e-06  ;;  %v218_v4 = vmax.f32 %v200_v44, 1e-06  ;;  %v407_v51 = vsub.f32 %v116_v17, %v636_v59  ;;  %v383_v54 = vsub.f32 %v380_v0, %v382_v48  ;;  %v401_v43 = vld [vmem:[#allocation3 + $0xe8] sm:$0xff] }
  0x73   :  { %472 = vrsqrt.f32 %v671_v24  ;;  %v371_v56 = vadd.f32 %v370_v46, %v364_v45  ;;  %v377_v57 = vmul.f32 %v376_v47, %v376_v47  ;;  %v203_v5 = vsel %vm640_vm2, %v162_v50, %v116_v17 }
  0x74   :  { %474 = vrsqrt.f32 %v673_v26  ;;  %v217_v7 = vmin.f32 %v216_v20, 0.999999  ;;  %v219_v8 = vmin.f32 %v218_v4, 0.999999  ;;  %v206_v9 = vsel %vm640_vm2, %v205_v52, %v604_v62 }
  0x75   :  { %476 = vrsqrt.f32 %v678_v63  ;;  %v209_v10 = vsel %vm640_vm2, %v208_v53, %v617_v14  ;;  %v408_v11 = vmul.f32 %v407_v51, %v407_v51  ;;  %v384_v13 = vmul.f32 %v383_v54, %v383_v54 }
  0x76   :  { %v224_v19 = vmax.f32 %v203_v5, 1e-06  ;;  %vm242_vm4 = vcmp.eq.f32.partialorder %v665_v39, inf  ;;  %v245_v27 = vand.u32 2147483648, %v665_v39  ;;  %v378_v30 = vadd.f32 %v377_v57, %v371_v56 }
  0x77   :  { %v226_v3 = vsub.f32 %v217_v7, %v206_v9  ;;  %v228_v31 = vsub.f32 %v219_v8, %v209_v10  ;;  %vm244_vm5 = vcmp.eq.f32.partialorder %v665_v39, 0.0  ;;  %vm235_vm6 = vcmp.eq.f32.partialorder %v671_v24, inf }
  0x78   :  { %vm237_vm7 = vcmp.eq.f32.partialorder %v671_v24, 0.0  ;;  %v238_v14 = vand.u32 2147483648, %v671_v24  ;;  %vm251_vm8 = vcmp.eq.f32.partialorder %v673_v26, inf  ;;  %vm253_vm9 = vcmp.eq.f32.partialorder %v673_v26, 0.0 }
  0x79   :  { %v254_v2 = vand.u32 2147483648, %v673_v26  ;;  %vm258_vm10 = vcmp.eq.f32.partialorder %v678_v63, inf  ;;  %v261_v37 = vand.u32 2147483648, %v678_v63  ;;  %vm260_vm11 = vcmp.eq.f32.partialorder %v678_v63, 0.0 }
  0x7a   :  { %v385_v40 = vadd.f32 %v384_v13, %v378_v30  ;;  %v225_v41 = vmin.f32 %v224_v19, 0.999999  ;;  %v227_v23 = vmul.f32 %v226_v3, %v226_v3  ;;  %v229_v45 = vmul.f32 %v228_v31, %v228_v31 }
  0x7b   :  { %v471_v18 = vpop.eup %470  ;;  %v196_v38 = vsel %vm640_vm2, %v634_v25, %v632_v12  ;;  %v398_v17 = vmul.f32 %v397_v58, %v397_v58  ;;  %v412_v51 = vmul.f32 %v411_v16, %v411_v16 }
  0x7c   :  { %v241_v62 = vmul.f32 %v471_v18, %v665_v39  ;;  %v392_v50 = vadd.f32 %v391_v15, %v385_v40  ;;  %v230_v52 = vadd.f32 %v229_v45, %v227_v23  ;;  %v266_v54 = vsub.f32 %v225_v41, %v196_v38 }
  0x7d   :  { %v473_v32 = vpop.eup %472  ;;  %v413_v57 = vadd.f32 %v412_v51, %v408_v11 }
  0x7e   :  { %v475_v33 = vpop.eup %474  ;;  %v234_v34 = vmul.f32 %v473_v32, %v671_v24  ;;  %v243_v35 = vsel %vm242_vm4, %v665_v39, %v241_v62  ;;  %v403_v39 = vld [vmem:[#allocation6 + $0xe8] sm:$0xff]  ;;  %v267_v28 = vmul.f32 %v266_v54, %v266_v54 }
  0x7f   :  { %v477_v21 = vpop.eup %476  ;;  %v246_v36 = vsel %vm244_vm5, %v245_v27, %v243_v35  ;;  %v250_v22 = vmul.f32 %v475_v33, %v673_v26  ;;  %v419_v60 = vmul.f32 0.5, %v413_v57 }
  0x80   :  { %v236_v42 = vsel %vm235_vm6, %v671_v24, %v234_v34  ;;  %v257_v29 = vmul.f32 %v477_v21, %v678_v63  ;;  %v404_v24 = vsub.f32 %v401_v43, %v403_v39 }
  0x81   :  { %v239_v44 = vsel %vm237_vm7, %v238_v14, %v236_v42  ;;  %v252_v0 = vsel %vm251_vm8, %v673_v26, %v250_v22  ;;  %v399_v26 = vadd.f32 %v398_v17, %v392_v50  ;;  %v420_v5 = vsel %vm75_vm14, %v419_v60, 0.0 }
  0x82   :  { %v247_v46 = vsub.f32 %v239_v44, %v246_v36  ;;  %v255_v47 = vsel %vm253_vm9, %v254_v2, %v252_v0  ;;  %v259_v48 = vsel %vm258_vm10, %v678_v63, %v257_v29  ;;  %v405_v56 = vmul.f32 %v404_v24, %v404_v24 }
  0x83   :  { %v262_v49 = vsel %vm260_vm11, %v261_v37, %v259_v48 }
  0x84   :  { %v248_v20 = vmul.f32 %v247_v46, %v247_v46  ;;  %v263_v4 = vsub.f32 %v255_v47, %v262_v49  ;;  %v406_v25 = vadd.f32 %v405_v56, %v399_v26 }
  0x86   :  { %v264_v53 = vmul.f32 %v263_v4, %v263_v4 }
  0x88   :  { %v265_v55 = vadd.f32 %v264_v53, %v248_v20 }
  0x8a   :  { %v414_v12 = vadd.f32 %v265_v55, %v230_v52 }
  0x8c   :  { %v415_v63 = vmul.f32 5.0, %v414_v12 }
  0x8e   :  { %v416_v61 = vadd.f32 %v415_v63, %v267_v28 }
  0x90   :  { %v417_v1 = vadd.f32 %v416_v61, %v406_v25 }
  0x92   :  { %v418_v7 = vsel %vm73_vm3, %v417_v1, 0.0 }
  0x93   :  { %v421_v8 = vadd.f32 %v420_v5, %v418_v7 }
  0x95   :  { %423 = vadd.xlane.f32.xlu0 %v421_v8 }
 0x122   :  { %v424_v9 = vpop.xlane.xlu0 %423 }
 0x123   :  { %v425_v10 = vrot.slane %v424_v9, 4 }
 0x125   :  { %v426_v11 = vadd.f32 %v425_v10, %v424_v9 }
 0x127   :  { %v427_v6 = vrot.slane %v426_v11, 2 }
 0x129   :  { %v428_v13 = vadd.f32 %v427_v6, %v426_v11 }
 0x12b   :  { %v429_v15 = vrot.slane %v428_v13, 1 }
 0x12d   :  { %v430_v58 = vadd.f32 %v429_v15, %v428_v13 }
 0x12f   :  { %459 = vpush %v430_v58 }
 0x160   :  { %s460_s1 = spop %459 }
 0x161   :  { %s441_s6 = smul.f32 0.5, %s460_s1 }
 0x163   :  { %443 = sst [smem:[#allocation8]] %s441_s6 }
 0x164   :  { %531 = shalt.err (!%p528_p4)
}
 0x165   :  { %s542_s14 = smov [#allocation8]  }
 0x166   :  { %451 = dma.smem_to_hbm %s542_s14, 16, %s740_s2, [#allocation5]  }
 0x167   :  { %536 = dma.done.wait [#allocation5], 16  }
 0x168   :  { %537 = vsyncadd [#allocation5], 4294967280 }
 0x169   :  { %455 = sfence }
 0x16a   :  { %456 = vsyncpa [#allocation4], 1 }
 0x16b   :  { %457 = vsyncpa [#allocation7], 1 }
 0x16c   :  { %458 = vsyncpa [#allocation5], 1 }

</bundles_post_ra>
